<compile_context>
chip_gen: v6e
topology: v6e:2x2x1
jax: 0.10.0
libtpu: 0.0.40
codegen_flags: <defaults>
</compile_context>

<pallas_src>
import math

import jax
import jax.numpy as jnp
from jax import lax
from jax.experimental import pallas as pl
from jax.experimental.pallas import tpu as pltpu


# ---------------------------------------------------------------------------
# VMEM budget / tile selection (generation-aware).
# ---------------------------------------------------------------------------
def _vmem_limit_bytes():
    cap = 64 * 1024 * 1024                      # conservative default (v7x per-core)
    try:
        info = pltpu.get_tpu_info()
        cap = int(getattr(info, "vmem_capacity_bytes", cap))
    except Exception:
        pass
    # Leave headroom for compiler-internal scratch; cap well below physical.
    return max(32 * 1024 * 1024, min(int(cap * 0.75), 112 * 1024 * 1024))


def _choose_tile_v(V, B, Q, Dh, C, HW, vmem_limit, cap=8192):
    """Largest multiple-of-128 V tile whose per-step VMEM footprint fits."""
    # Constant / once-loaded operands (+ tok scratch).  Counted double-buffered
    # to stay safe if the single-buffer (pl.Buffered(1)) path is unavailable.
    const_bytes = 2 * (B * C * HW * 2 + B * Dh * HW * 2 + Dh * C * 2
                       + Dh * 4 + Q * Dh * 4) + B * Q * Dh * 4

    def step_bytes(tv):
        streams = 2 * (Dh * tv * 2        # embed W^T tile (bf16), 2 buffers
                       + tv * 4           # embed bias tile (f32)
                       + Q * tv * 2       # parcel mask tile (bf16)
                       + B * tv * 4)      # output block (f32)
        interm = (B * Q * tv + 2 * Q * tv) * 4   # scores + f32 mask + product
        return streams + interm

    budget = vmem_limit - const_bytes - (8 << 20)
    tv = min(cap, pl.cdiv(V, 128) * 128)
    tv = max(128, (tv // 128) * 128)
    while tv > 128 and step_bytes(tv) > budget:
        tv -= 128
    return tv


# ---------------------------------------------------------------------------
# Fused kernel builder.
# ---------------------------------------------------------------------------
def _build_call(B, C, HW, Dh, Q, Vp, tile_v, vmem_limit, single_buffer_consts):
    n_v = Vp // tile_v

    def kernel(x_ref, pos_ref, wconv_ref, bconv_ref, q_ref,
               wt_ref, bemb_ref, mask_ref, o_ref, tok_sc):
        # ---- stages 1 + 2 : once, at the first V tile, for ALL batches.
        # tok_sc persists in VMEM scratch across the sequential V axis.
        @pl.when(pl.program_id(0) == 0)
        def _():
            # TODO(synk): for very large C*HW, tile this matmul over C/HW
            # (e.g. pltpu.emit_pipeline) instead of loading x whole.
            for b in range(B):                       # B is small & static
                x_b = x_ref[b]                       # (C, HW) bf16
                kvT = jnp.dot(wconv_ref[...], x_b,
                              preferred_element_type=jnp.float32)   # (Dh, HW)
                kvT = kvT + bconv_ref[...] + pos_ref[b].astype(jnp.float32)

                # TODO(synk): stands in for the external build_transformer(...)
                # enc/dec stack: one cross-attention of query_embed over kv.
                # TODO(synk): at production shapes also cast these attention
                # operands to bf16; kept f32 here (per-batch one-off, not on
                # the bandwidth-critical path) for a tight verification bound.
                s = jnp.dot(q_ref[...], kvT,
                            preferred_element_type=jnp.float32)      # (Q, HW)
                s = s - jnp.max(s, axis=-1, keepdims=True)
                p = jnp.exp(s)
                p = p / jnp.sum(p, axis=-1, keepdims=True)            # exact
                tok = lax.dot_general(                                 # p @ kv
                    p, kvT, dimension_numbers=(((1,), (1,)), ((), ())),
                    preferred_element_type=jnp.float32)                # (Q, Dh)
                tok_sc[b * Q:(b + 1) * Q, :] = tok

        # ---- stage 3 : every V tile — one (B*Q, Dh)@(Dh, tile_v) MXU matmul,
        # bias, parcel mask, sum over Q; single (B, tile_v) dense store.
        scores = jnp.dot(tok_sc[...].astype(jnp.bfloat16), wt_ref[...],
                         preferred_element_type=jnp.float32)           # (B*Q, tv)
        mask_f = mask_ref[...].astype(jnp.float32)                     # (Q, tv)
        bias = bemb_ref[...]                                           # (1, tv)
        rows = []
        for b in range(B):
            sb = scores[b * Q:(b + 1) * Q, :] + bias
            rows.append(jnp.sum(sb * mask_f, axis=0, keepdims=True))   # (1, tv)
        o_ref[...] = jnp.concatenate(rows, axis=0)                     # (B, tv)

    def const_spec(shape):
        idx = lambda v: (0,) * len(shape)
        if single_buffer_consts:
            # Grid-invariant block: single buffer saves VMEM (no prefetch needed).
            return pl.BlockSpec(shape, idx, pipeline_mode=pl.Buffered(1))
        return pl.BlockSpec(shape, idx)

    grid_spec = pltpu.PrefetchScalarGridSpec(
        num_scalar_prefetch=0,
        grid=(n_v,),
        in_specs=[
            const_spec((B, C, HW)),                          # x   (bf16)
            const_spec((B, Dh, HW)),                         # pos (bf16)
            const_spec((Dh, C)),                             # conv W (bf16)
            const_spec((Dh, 1)),                             # conv b (f32)
            const_spec((Q, Dh)),                             # scaled queries (f32)
            pl.BlockSpec((Dh, tile_v), lambda v: (0, v)),    # embed W^T tile (bf16)
            pl.BlockSpec((1, tile_v), lambda v: (0, v)),     # embed bias tile (f32)
            pl.BlockSpec((Q, tile_v), lambda v: (0, v)),     # parcel mask tile (bf16)
        ],
        out_specs=pl.BlockSpec((B, tile_v), lambda v: (0, v)),
        scratch_shapes=[pltpu.VMEM((B * Q, Dh), jnp.float32)],   # attention tokens
    )

    return pl.pallas_call(
        kernel,
        out_shape=jax.ShapeDtypeStruct((B, Vp), jnp.float32),
        grid_spec=grid_spec,
        compiler_params=pltpu.CompilerParams(
            # The single V axis MUST iterate sequentially: tok_sc is written at
            # v==0 and read by every later tile.  TODO(synk): on v7x, hoist the
            # v==0 precompute into a tiny prologue call so this axis can be
            # made "parallel" across both TensorCores.
            dimension_semantics=("arbitrary",),
            vmem_limit_bytes=int(vmem_limit),
        ),
    )


# ---------------------------------------------------------------------------
# Host wrapper: layout / dtype prep + padding + call.
# ---------------------------------------------------------------------------
def fused_brain_encoder(params, backbone_feat, pos_embed, *, max_tile_v=8192):
    B, C, H, W = backbone_feat.shape
    Dh = params["input_proj_w"].shape[0]
    Q = params["query_embed"].shape[0]
    V = params["embed_w"].shape[0]
    HW = H * W

    vmem_limit = _vmem_limit_bytes()
    tile_v = _choose_tile_v(V, B, Q, Dh, C, HW, vmem_limit, cap=max_tile_v)
    n_v = pl.cdiv(V, tile_v)
    Vp = n_v * tile_v
    pad_v = Vp - V

    inv_sqrt_d = 1.0 / math.sqrt(Dh)

    # One-off parameter / activation layout prep (no per-forward transposes of
    # the big activation; NCHW is already (C, HW)-major).  bf16 only for matmul
    # / bandwidth-critical operands; biases stay f32.
    x_chw = backbone_feat.reshape(B, C, HW).astype(jnp.bfloat16)
    pos_chw = pos_embed.reshape(B, Dh, HW).astype(jnp.bfloat16)
    w_conv = params["input_proj_w"].reshape(Dh, C).astype(jnp.bfloat16)
    b_conv = params["input_proj_b"].reshape(Dh, 1).astype(jnp.float32)
    q_scaled = (params["query_embed"] * inv_sqrt_d).astype(jnp.float32)
    wt_emb = jnp.pad(params["embed_w"].T, ((0, 0), (0, pad_v))).astype(jnp.bfloat16)
    b_emb = jnp.pad(params["embed_b"], (0, pad_v)).reshape(1, Vp).astype(jnp.float32)
    mask_t = jnp.pad(params["parcel_mask"].T, ((0, 0), (0, pad_v))).astype(jnp.bfloat16)

    args = (x_chw, pos_chw, w_conv, b_conv, q_scaled, wt_emb, b_emb, mask_t)
    try:
        out = _build_call(B, C, HW, Dh, Q, Vp, tile_v, vmem_limit, True)(*args)
    except Exception:
        # TODO(synk): pipeline_mode=pl.Buffered(1) unsupported on this JAX
        # version — fall back to default double buffering for the constants.
        out = _build_call(B, C, HW, Dh, Q, Vp, tile_v, vmem_limit, False)(*args)
    return out[:, :V]


def brain_encoder_forward(params, backbone_feat, pos_embed):
    pred = fused_brain_encoder(params, backbone_feat, pos_embed)
    return {"pred": pred}


# ---------------------------------------------------------------------------
# Pure-JAX (f32) reference for verification.
# ---------------------------------------------------------------------------
def reference_forward(params, backbone_feat, pos_embed):
    B, C, H, W = backbone_feat.shape
    Dh = params["input_proj_w"].shape[0]
    x = jnp.transpose(backbone_feat, (0, 2, 3, 1)).reshape(B * H * W, C)
    src = x @ params["input_proj_w"].reshape(Dh, C).T + params["input_proj_b"]
    src = src.reshape(B, H, W, Dh)
    pos = jnp.transpose(pos_embed, (0, 2, 3, 1))
    kv = (src + pos).reshape(B, H * W, Dh)
    q = params["query_embed"]
    s = jnp.einsum("qd,bkd->bqk", q, kv) / jnp.sqrt(jnp.float32(Dh))
    p = jax.nn.softmax(s, axis=-1)
    tok = jnp.einsum("bqk,bkd->bqd", p, kv)
    pred = tok @ params["embed_w"].T + params["embed_b"]          # (B, Q, V)
    pred = jnp.moveaxis(pred, 1, -1)                              # (B, V, Q)
    pred = pred * params["parcel_mask"][None]                     # (V, Q) bcast
    return jnp.sum(pred, axis=-1)                                 # (B, V)


if __name__ == "__main__":
    # Small, consistent synthetic configuration (V deliberately NOT a multiple
    # of 128 to exercise the padded-tile path).
    B = 2            # batch
    C = 32           # backbone num_channels
    H = W = 8        # backbone feature spatial dims
    Dh = 32          # hidden_dim (transformer d_model)
    Q = 8            # num_queries = num_parcels
    V = 200          # num_hemi_voxels

    key = jax.random.PRNGKey(0)
    keys = jax.random.split(key, 8)

    # TODO(synk): build_backbone(args) is external; its output feature map and
    # positional embedding are simulated with deterministic random tensors.
    backbone_feat = jax.random.normal(keys[0], (B, C, H, W), jnp.float32)
    pos_embed = jax.random.normal(keys[1], (B, Dh, H, W), jnp.float32) * 0.1

    params = {
        "input_proj_w": jax.random.normal(keys[2], (Dh, C, 1, 1), jnp.float32)
        * (1.0 / math.sqrt(C)),
        "input_proj_b": jax.random.normal(keys[3], (Dh,), jnp.float32) * 0.01,
        "query_embed": jax.random.normal(keys[4], (Q, Dh), jnp.float32),
        "embed_w": jax.random.normal(keys[5], (V, Dh), jnp.float32)
        * (1.0 / math.sqrt(Dh)),
        "embed_b": jax.random.normal(keys[6], (V,), jnp.float32) * 0.01,
    }
    # parcel_mask: (num_hemi_voxels, num_parcels), parcel membership (built with
    # scatter in PyTorch; here a deterministic partition).
    parcel_id = jnp.arange(V) % Q
    params["parcel_mask"] = jax.nn.one_hot(parcel_id, Q, dtype=jnp.float32)

    out = brain_encoder_forward(params, backbone_feat, pos_embed)
    pred = jax.block_until_ready(out["pred"])

    ref = reference_forward(params, backbone_feat, pos_embed)
    assert pred.shape == (B, V)
    max_err = float(jnp.max(jnp.abs(pred - ref)))
    # Tolerance covers bf16 rounding of the conv / embed matmul operands
    # (accumulation is f32, softmax normalization is exact).
    assert jnp.allclose(pred, ref, atol=5e-2, rtol=5e-2), max_err
    print("KERNEL_OK")
</pallas_src>

<mosaic_0001>
module attributes {stable_mosaic.version = 11 : i64} {
  func.func @kernel(%arg0: i32, %arg1: memref<2x32x64xbf16, #tpu.memory_space<vmem>>, %arg2: memref<2x32x64xbf16, #tpu.memory_space<vmem>>, %arg3: memref<32x32xbf16, #tpu.memory_space<vmem>>, %arg4: memref<32x1xf32, #tpu.memory_space<vmem>>, %arg5: memref<8x32xf32, #tpu.memory_space<vmem>>, %arg6: memref<32x256xbf16, #tpu.memory_space<vmem>>, %arg7: memref<1x256xf32, #tpu.memory_space<vmem>>, %arg8: memref<8x256xbf16, #tpu.memory_space<vmem>>, %arg9: memref<2x256xf32, #tpu.memory_space<vmem>>, %arg10: memref<16x32xf32, #tpu.memory_space<vmem>>) attributes {dimension_semantics = [#tpu.dimension_semantics<arbitrary>], iteration_bounds = array<i64: 1>, scalar_prefetch = 0 : i64, scratch_operands = 1 : i64, tpu.core_type = #tpu.core_type<tc>, window_params = [{pipeline_mode = #tpu.pipeline_mode<synchronous>, transform_indices = @transform_0, window_bounds = array<i64: 2, 32, 64>}, {pipeline_mode = #tpu.pipeline_mode<synchronous>, transform_indices = @transform_1, window_bounds = array<i64: 2, 32, 64>}, {pipeline_mode = #tpu.pipeline_mode<synchronous>, transform_indices = @transform_2, window_bounds = array<i64: 32, 32>}, {pipeline_mode = #tpu.pipeline_mode<synchronous>, transform_indices = @transform_3, window_bounds = array<i64: 32, 1>}, {pipeline_mode = #tpu.pipeline_mode<synchronous>, transform_indices = @transform_4, window_bounds = array<i64: 8, 32>}, {transform_indices = @transform_5, window_bounds = array<i64: 32, 256>}, {transform_indices = @transform_6, window_bounds = array<i64: 1, 256>}, {transform_indices = @transform_7, window_bounds = array<i64: 8, 256>}, {transform_indices = @transform_8, window_bounds = array<i64: 2, 256>}]} {
    %c0_i32 = arith.constant 0 : i32
    %0 = arith.cmpi eq, %arg0, %c0_i32 : i32
    %1 = arith.extui %0 : i1 to i32
    %c0_i32_0 = arith.constant 0 : i32
    %2 = arith.cmpi ne, %1, %c0_i32_0 : i32
    scf.if %2 {
      %c0_12 = arith.constant 0 : index
      %c0_13 = arith.constant 0 : index
      %c0_14 = arith.constant 0 : index
      %24 = vector.load %arg1[%c0_12, %c0_13, %c0_14] : memref<2x32x64xbf16, #tpu.memory_space<vmem>>, vector<1x32x64xbf16>
      %25 = vector.shape_cast %24 : vector<1x32x64xbf16> to vector<32x64xbf16>
      %c0_15 = arith.constant 0 : index
      %c0_16 = arith.constant 0 : index
      %26 = vector.load %arg3[%c0_15, %c0_16] : memref<32x32xbf16, #tpu.memory_space<vmem>>, vector<32x32xbf16>
      %cst_17 = arith.constant dense<0.000000e+00> : vector<32x64xf32>
      %27 = tpu.matmul %26, %25, %cst_17 {dimension_numbers = #tpu.dot_dimension_numbers<[1], [0], [0], [1], [0, 0, 1, 1], [], []>} : vector<32x32xbf16>, vector<32x64xbf16>, vector<32x64xf32> -> vector<32x64xf32>
      %c0_18 = arith.constant 0 : index
      %c0_19 = arith.constant 0 : index
      %28 = vector.load %arg4[%c0_18, %c0_19] : memref<32x1xf32, #tpu.memory_space<vmem>>, vector<32x1xf32>
      %29 = vector.broadcast %28 : vector<32x1xf32> to vector<32x64xf32>
      %30 = arith.addf %27, %29 : vector<32x64xf32>
      %c0_20 = arith.constant 0 : index
      %c0_21 = arith.constant 0 : index
      %c0_22 = arith.constant 0 : index
      %31 = vector.load %arg2[%c0_20, %c0_21, %c0_22] : memref<2x32x64xbf16, #tpu.memory_space<vmem>>, vector<1x32x64xbf16>
      %32 = vector.shape_cast %31 : vector<1x32x64xbf16> to vector<32x64xbf16>
      %33 = arith.extf %32 : vector<32x64xbf16> to vector<32x64xf32>
      %34 = arith.addf %30, %33 : vector<32x64xf32>
      %c0_23 = arith.constant 0 : index
      %c0_24 = arith.constant 0 : index
      %35 = vector.load %arg5[%c0_23, %c0_24] : memref<8x32xf32, #tpu.memory_space<vmem>>, vector<8x32xf32>
      %cst_25 = arith.constant dense<0.000000e+00> : vector<8x64xf32>
      %36 = tpu.matmul %35, %34, %cst_25 {dimension_numbers = #tpu.dot_dimension_numbers<[1], [0], [0], [1], [0, 0, 1, 1], [], []>} : vector<8x32xf32>, vector<32x64xf32>, vector<8x64xf32> -> vector<8x64xf32>
      %cst_26 = arith.constant dense<0xFF800000> : vector<8xf32>
      %37 = vector.multi_reduction <maximumf>, %36, %cst_26 [1] : vector<8x64xf32> to vector<8xf32>
      %38 = vector.shape_cast %37 : vector<8xf32> to vector<8x1xf32>
      %39 = vector.broadcast %38 : vector<8x1xf32> to vector<8x64xf32>
      %40 = arith.subf %36, %39 : vector<8x64xf32>
      %41 = math.exp %40 : vector<8x64xf32>
      %cst_27 = arith.constant dense<0.000000e+00> : vector<8xf32>
      %42 = vector.multi_reduction <add>, %41, %cst_27 [1] : vector<8x64xf32> to vector<8xf32>
      %43 = vector.shape_cast %42 : vector<8xf32> to vector<8x1xf32>
      %44 = vector.broadcast %43 : vector<8x1xf32> to vector<8x64xf32>
      %45 = arith.divf %41, %44 : vector<8x64xf32>
      %cst_28 = arith.constant dense<0.000000e+00> : vector<8x32xf32>
      %46 = tpu.matmul %45, %34, %cst_28 {dimension_numbers = #tpu.dot_dimension_numbers<[1], [1], [0], [0], [0, 0, 1, 0], [], []>} : vector<8x64xf32>, vector<32x64xf32>, vector<8x32xf32> -> vector<8x32xf32>
      %c0_29 = arith.constant 0 : index
      %c0_30 = arith.constant 0 : index
      %47 = vector.load %arg10[%c0_29, %c0_30] : memref<16x32xf32, #tpu.memory_space<vmem>>, vector<8x32xf32>
      tpu.vector_store %arg10[%c0_29, %c0_30], %46 {strides = array<i32>} : memref<16x32xf32, #tpu.memory_space<vmem>>, vector<8x32xf32>,
      %c1 = arith.constant 1 : index
      %c0_31 = arith.constant 0 : index
      %c0_32 = arith.constant 0 : index
      %48 = vector.load %arg1[%c1, %c0_31, %c0_32] : memref<2x32x64xbf16, #tpu.memory_space<vmem>>, vector<1x32x64xbf16>
      %49 = vector.shape_cast %48 : vector<1x32x64xbf16> to vector<32x64xbf16>
      %c0_33 = arith.constant 0 : index
      %c0_34 = arith.constant 0 : index
      %50 = vector.load %arg3[%c0_33, %c0_34] : memref<32x32xbf16, #tpu.memory_space<vmem>>, vector<32x32xbf16>
      %cst_35 = arith.constant dense<0.000000e+00> : vector<32x64xf32>
      %51 = tpu.matmul %50, %49, %cst_35 {dimension_numbers = #tpu.dot_dimension_numbers<[1], [0], [0], [1], [0, 0, 1, 1], [], []>} : vector<32x32xbf16>, vector<32x64xbf16>, vector<32x64xf32> -> vector<32x64xf32>
      %c0_36 = arith.constant 0 : index
      %c0_37 = arith.constant 0 : index
      %52 = vector.load %arg4[%c0_36, %c0_37] : memref<32x1xf32, #tpu.memory_space<vmem>>, vector<32x1xf32>
      %53 = vector.broadcast %52 : vector<32x1xf32> to vector<32x64xf32>
      %54 = arith.addf %51, %53 : vector<32x64xf32>
      %c1_38 = arith.constant 1 : index
      %c0_39 = arith.constant 0 : index
      %c0_40 = arith.constant 0 : index
      %55 = vector.load %arg2[%c1_38, %c0_39, %c0_40] : memref<2x32x64xbf16, #tpu.memory_space<vmem>>, vector<1x32x64xbf16>
      %56 = vector.shape_cast %55 : vector<1x32x64xbf16> to vector<32x64xbf16>
      %57 = arith.extf %56 : vector<32x64xbf16> to vector<32x64xf32>
      %58 = arith.addf %54, %57 : vector<32x64xf32>
      %c0_41 = arith.constant 0 : index
      %c0_42 = arith.constant 0 : index
      %59 = vector.load %arg5[%c0_41, %c0_42] : memref<8x32xf32, #tpu.memory_space<vmem>>, vector<8x32xf32>
      %cst_43 = arith.constant dense<0.000000e+00> : vector<8x64xf32>
      %60 = tpu.matmul %59, %58, %cst_43 {dimension_numbers = #tpu.dot_dimension_numbers<[1], [0], [0], [1], [0, 0, 1, 1], [], []>} : vector<8x32xf32>, vector<32x64xf32>, vector<8x64xf32> -> vector<8x64xf32>
      %cst_44 = arith.constant dense<0xFF800000> : vector<8xf32>
      %61 = vector.multi_reduction <maximumf>, %60, %cst_44 [1] : vector<8x64xf32> to vector<8xf32>
      %62 = vector.shape_cast %61 : vector<8xf32> to vector<8x1xf32>
      %63 = vector.broadcast %62 : vector<8x1xf32> to vector<8x64xf32>
      %64 = arith.subf %60, %63 : vector<8x64xf32>
      %65 = math.exp %64 : vector<8x64xf32>
      %cst_45 = arith.constant dense<0.000000e+00> : vector<8xf32>
      %66 = vector.multi_reduction <add>, %65, %cst_45 [1] : vector<8x64xf32> to vector<8xf32>
      %67 = vector.shape_cast %66 : vector<8xf32> to vector<8x1xf32>
      %68 = vector.broadcast %67 : vector<8x1xf32> to vector<8x64xf32>
      %69 = arith.divf %65, %68 : vector<8x64xf32>
      %cst_46 = arith.constant dense<0.000000e+00> : vector<8x32xf32>
      %70 = tpu.matmul %69, %58, %cst_46 {dimension_numbers = #tpu.dot_dimension_numbers<[1], [1], [0], [0], [0, 0, 1, 0], [], []>} : vector<8x64xf32>, vector<32x64xf32>, vector<8x32xf32> -> vector<8x32xf32>
      %c8 = arith.constant 8 : index
      %c0_47 = arith.constant 0 : index
      %71 = vector.load %arg10[%c8, %c0_47] : memref<16x32xf32, #tpu.memory_space<vmem>>, vector<8x32xf32>
      tpu.vector_store %arg10[%c8, %c0_47], %70 {strides = array<i32>} : memref<16x32xf32, #tpu.memory_space<vmem>>, vector<8x32xf32>,
    } else {
    }
    %c0 = arith.constant 0 : index
    %c0_1 = arith.constant 0 : index
    %3 = vector.load %arg10[%c0, %c0_1] : memref<16x32xf32, #tpu.memory_space<vmem>>, vector<16x32xf32>
    %4 = arith.truncf %3 : vector<16x32xf32> to vector<16x32xbf16>
    %c0_2 = arith.constant 0 : index
    %c0_3 = arith.constant 0 : index
    %5 = vector.load %arg6[%c0_2, %c0_3] : memref<32x256xbf16, #tpu.memory_space<vmem>>, vector<32x256xbf16>
    %cst = arith.constant dense<0.000000e+00> : vector<16x256xf32>
    %6 = tpu.matmul %4, %5, %cst {dimension_numbers = #tpu.dot_dimension_numbers<[1], [0], [0], [1], [0, 0, 1, 1], [], []>} : vector<16x32xbf16>, vector<32x256xbf16>, vector<16x256xf32> -> vector<16x256xf32>
    %c0_4 = arith.constant 0 : index
    %c0_5 = arith.constant 0 : index
    %7 = vector.load %arg8[%c0_4, %c0_5] : memref<8x256xbf16, #tpu.memory_space<vmem>>, vector<8x256xbf16>
    %8 = arith.extf %7 : vector<8x256xbf16> to vector<8x256xf32>
    %c0_6 = arith.constant 0 : index
    %c0_7 = arith.constant 0 : index
    %9 = vector.load %arg7[%c0_6, %c0_7] : memref<1x256xf32, #tpu.memory_space<vmem>>, vector<1x256xf32>
    %10 = vector.extract_strided_slice %6 {offsets = [0, 0], sizes = [8, 256], strides = [1, 1]} : vector<16x256xf32> to vector<8x256xf32>
    %11 = vector.broadcast %9 : vector<1x256xf32> to vector<8x256xf32>
    %12 = arith.addf %10, %11 : vector<8x256xf32>
    %13 = arith.mulf %12, %8 : vector<8x256xf32>
    %cst_8 = arith.constant dense<0.000000e+00> : vector<256xf32>
    %14 = vector.multi_reduction <add>, %13, %cst_8 [0] : vector<8x256xf32> to vector<256xf32>
    %15 = vector.shape_cast %14 : vector<256xf32> to vector<1x256xf32>
    %16 = vector.extract_strided_slice %6 {offsets = [8, 0], sizes = [8, 256], strides = [1, 1]} : vector<16x256xf32> to vector<8x256xf32>
    %17 = vector.broadcast %9 : vector<1x256xf32> to vector<8x256xf32>
    %18 = arith.addf %16, %17 : vector<8x256xf32>
    %19 = arith.mulf %18, %8 : vector<8x256xf32>
    %cst_9 = arith.constant dense<0.000000e+00> : vector<256xf32>
    %20 = vector.multi_reduction <add>, %19, %cst_9 [0] : vector<8x256xf32> to vector<256xf32>
    %21 = vector.shape_cast %20 : vector<256xf32> to vector<1x256xf32>
    %22 = tpu.concatenate %15, %21 in 0 : vector<1x256xf32>, vector<1x256xf32> -> vector<2x256xf32>
    %c0_10 = arith.constant 0 : index
    %c0_11 = arith.constant 0 : index
    %23 = vector.load %arg9[%c0_10, %c0_11] : memref<2x256xf32, #tpu.memory_space<vmem>>, vector<2x256xf32>
    tpu.vector_store %arg9[%c0_10, %c0_11], %22 {strides = array<i32>} : memref<2x256xf32, #tpu.memory_space<vmem>>, vector<2x256xf32>,
    return
  }
  func.func @transform_0(%arg0: i32) -> (i32, i32, i32) {
    %c0_i32 = arith.constant 0 : i32
    %c0_i32_0 = arith.constant 0 : i32
    %c0_i32_1 = arith.constant 0 : i32
    %c0_i32_2 = arith.constant 0 : i32
    return %c0_i32, %c0_i32_0, %c0_i32_1 : i32, i32, i32
  }
  func.func @transform_1(%arg0: i32) -> (i32, i32, i32) {
    %c0_i32 = arith.constant 0 : i32
    %c0_i32_0 = arith.constant 0 : i32
    %c0_i32_1 = arith.constant 0 : i32
    %c0_i32_2 = arith.constant 0 : i32
    return %c0_i32, %c0_i32_0, %c0_i32_1 : i32, i32, i32
  }
  func.func @transform_2(%arg0: i32) -> (i32, i32) {
    %c0_i32 = arith.constant 0 : i32
    %c0_i32_0 = arith.constant 0 : i32
    %c0_i32_1 = arith.constant 0 : i32
    return %c0_i32, %c0_i32_0 : i32, i32
  }
  func.func @transform_3(%arg0: i32) -> (i32, i32) {
    %c0_i32 = arith.constant 0 : i32
    %c0_i32_0 = arith.constant 0 : i32
    %c0_i32_1 = arith.constant 0 : i32
    return %c0_i32, %c0_i32_0 : i32, i32
  }
  func.func @transform_4(%arg0: i32) -> (i32, i32) {
    %c0_i32 = arith.constant 0 : i32
    %c0_i32_0 = arith.constant 0 : i32
    %c0_i32_1 = arith.constant 0 : i32
    return %c0_i32, %c0_i32_0 : i32, i32
  }
  func.func @transform_5(%arg0: i32) -> (i32, i32) {
    %c0_i32 = arith.constant 0 : i32
    %c0_i32_0 = arith.constant 0 : i32
    return %c0_i32, %arg0 : i32, i32
  }
  func.func @transform_6(%arg0: i32) -> (i32, i32) {
    %c0_i32 = arith.constant 0 : i32
    %c0_i32_0 = arith.constant 0 : i32
    return %c0_i32, %arg0 : i32, i32
  }
  func.func @transform_7(%arg0: i32) -> (i32, i32) {
    %c0_i32 = arith.constant 0 : i32
    %c0_i32_0 = arith.constant 0 : i32
    return %c0_i32, %arg0 : i32, i32
  }
  func.func @transform_8(%arg0: i32) -> (i32, i32) {
    %c0_i32 = arith.constant 0 : i32
    %c0_i32_0 = arith.constant 0 : i32
    return %c0_i32, %arg0 : i32, i32
  }
}

module attributes {stable_mosaic.version = 11 : i64} {
  func.func @kernel(%arg0: i32, %arg1: memref<2x32x64xbf16, #tpu.memory_space<vmem>>, %arg2: memref<2x32x64xbf16, #tpu.memory_space<vmem>>, %arg3: memref<32x32xbf16, #tpu.memory_space<vmem>>, %arg4: memref<32x1xf32, #tpu.memory_space<vmem>>, %arg5: memref<8x32xf32, #tpu.memory_space<vmem>>, %arg6: memref<32x256xbf16, #tpu.memory_space<vmem>>, %arg7: memref<1x256xf32, #tpu.memory_space<vmem>>, %arg8: memref<8x256xbf16, #tpu.memory_space<vmem>>, %arg9: memref<2x256xf32, #tpu.memory_space<vmem>>, %arg10: memref<16x32xf32, #tpu.memory_space<vmem>>) attributes {dimension_semantics = [#tpu.dimension_semantics<arbitrary>], iteration_bounds = array<i64: 1>, scalar_prefetch = 0 : i64, scratch_operands = 1 : i64, tpu.core_type = #tpu.core_type<tc>, window_params = [{pipeline_mode = #tpu.pipeline_mode<synchronous>, transform_indices = @transform_0, window_bounds = array<i64: 2, 32, 64>}, {pipeline_mode = #tpu.pipeline_mode<synchronous>, transform_indices = @transform_1, window_bounds = array<i64: 2, 32, 64>}, {pipeline_mode = #tpu.pipeline_mode<synchronous>, transform_indices = @transform_2, window_bounds = array<i64: 32, 32>}, {pipeline_mode = #tpu.pipeline_mode<synchronous>, transform_indices = @transform_3, window_bounds = array<i64: 32, 1>}, {pipeline_mode = #tpu.pipeline_mode<synchronous>, transform_indices = @transform_4, window_bounds = array<i64: 8, 32>}, {transform_indices = @transform_5, window_bounds = array<i64: 32, 256>}, {transform_indices = @transform_6, window_bounds = array<i64: 1, 256>}, {transform_indices = @transform_7, window_bounds = array<i64: 8, 256>}, {transform_indices = @transform_8, window_bounds = array<i64: 2, 256>}]} {
    %c0_i32 = arith.constant 0 : i32
    %0 = arith.cmpi eq, %arg0, %c0_i32 : i32
    %1 = arith.extui %0 : i1 to i32
    %c0_i32_0 = arith.constant 0 : i32
    %2 = arith.cmpi ne, %1, %c0_i32_0 : i32
    scf.if %2 {
      %c0_12 = arith.constant 0 : index
      %c0_13 = arith.constant 0 : index
      %c0_14 = arith.constant 0 : index
      %24 = vector.load %arg1[%c0_12, %c0_13, %c0_14] : memref<2x32x64xbf16, #tpu.memory_space<vmem>>, vector<1x32x64xbf16>
      %25 = vector.shape_cast %24 : vector<1x32x64xbf16> to vector<32x64xbf16>
      %c0_15 = arith.constant 0 : index
      %c0_16 = arith.constant 0 : index
      %26 = vector.load %arg3[%c0_15, %c0_16] : memref<32x32xbf16, #tpu.memory_space<vmem>>, vector<32x32xbf16>
      %cst_17 = arith.constant dense<0.000000e+00> : vector<32x64xf32>
      %27 = tpu.matmul %26, %25, %cst_17 {dimension_numbers = #tpu.dot_dimension_numbers<[1], [0], [0], [1], [0, 0, 1, 1], [], []>} : vector<32x32xbf16>, vector<32x64xbf16>, vector<32x64xf32> -> vector<32x64xf32>
      %c0_18 = arith.constant 0 : index
      %c0_19 = arith.constant 0 : index
      %28 = vector.load %arg4[%c0_18, %c0_19] : memref<32x1xf32, #tpu.memory_space<vmem>>, vector<32x1xf32>
      %29 = vector.broadcast %28 : vector<32x1xf32> to vector<32x64xf32>
      %30 = arith.addf %27, %29 : vector<32x64xf32>
      %c0_20 = arith.constant 0 : index
      %c0_21 = arith.constant 0 : index
      %c0_22 = arith.constant 0 : index
      %31 = vector.load %arg2[%c0_20, %c0_21, %c0_22] : memref<2x32x64xbf16, #tpu.memory_space<vmem>>, vector<1x32x64xbf16>
      %32 = vector.shape_cast %31 : vector<1x32x64xbf16> to vector<32x64xbf16>
      %33 = arith.extf %32 : vector<32x64xbf16> to vector<32x64xf32>
      %34 = arith.addf %30, %33 : vector<32x64xf32>
      %c0_23 = arith.constant 0 : index
      %c0_24 = arith.constant 0 : index
      %35 = vector.load %arg5[%c0_23, %c0_24] : memref<8x32xf32, #tpu.memory_space<vmem>>, vector<8x32xf32>
      %cst_25 = arith.constant dense<0.000000e+00> : vector<8x64xf32>
      %36 = tpu.matmul %35, %34, %cst_25 {dimension_numbers = #tpu.dot_dimension_numbers<[1], [0], [0], [1], [0, 0, 1, 1], [], []>} : vector<8x32xf32>, vector<32x64xf32>, vector<8x64xf32> -> vector<8x64xf32>
      %cst_26 = arith.constant dense<0xFF800000> : vector<8xf32>
      %37 = vector.multi_reduction <maximumf>, %36, %cst_26 [1] : vector<8x64xf32> to vector<8xf32>
      %38 = vector.shape_cast %37 : vector<8xf32> to vector<8x1xf32>
      %39 = vector.broadcast %38 : vector<8x1xf32> to vector<8x64xf32>
      %40 = arith.subf %36, %39 : vector<8x64xf32>
      %41 = math.exp %40 : vector<8x64xf32>
      %cst_27 = arith.constant dense<0.000000e+00> : vector<8xf32>
      %42 = vector.multi_reduction <add>, %41, %cst_27 [1] : vector<8x64xf32> to vector<8xf32>
      %43 = vector.shape_cast %42 : vector<8xf32> to vector<8x1xf32>
      %44 = vector.broadcast %43 : vector<8x1xf32> to vector<8x64xf32>
      %45 = arith.divf %41, %44 : vector<8x64xf32>
      %cst_28 = arith.constant dense<0.000000e+00> : vector<8x32xf32>
      %46 = tpu.matmul %45, %34, %cst_28 {dimension_numbers = #tpu.dot_dimension_numbers<[1], [1], [0], [0], [0, 0, 1, 0], [], []>} : vector<8x64xf32>, vector<32x64xf32>, vector<8x32xf32> -> vector<8x32xf32>
      %c0_29 = arith.constant 0 : index
      %c0_30 = arith.constant 0 : index
      %47 = vector.load %arg10[%c0_29, %c0_30] : memref<16x32xf32, #tpu.memory_space<vmem>>, vector<8x32xf32>
      tpu.vector_store %arg10[%c0_29, %c0_30], %46 {strides = array<i32>} : memref<16x32xf32, #tpu.memory_space<vmem>>, vector<8x32xf32>,
      %c1 = arith.constant 1 : index
      %c0_31 = arith.constant 0 : index
      %c0_32 = arith.constant 0 : index
      %48 = vector.load %arg1[%c1, %c0_31, %c0_32] : memref<2x32x64xbf16, #tpu.memory_space<vmem>>, vector<1x32x64xbf16>
      %49 = vector.shape_cast %48 : vector<1x32x64xbf16> to vector<32x64xbf16>
      %c0_33 = arith.constant 0 : index
      %c0_34 = arith.constant 0 : index
      %50 = vector.load %arg3[%c0_33, %c0_34] : memref<32x32xbf16, #tpu.memory_space<vmem>>, vector<32x32xbf16>
      %cst_35 = arith.constant dense<0.000000e+00> : vector<32x64xf32>
      %51 = tpu.matmul %50, %49, %cst_35 {dimension_numbers = #tpu.dot_dimension_numbers<[1], [0], [0], [1], [0, 0, 1, 1], [], []>} : vector<32x32xbf16>, vector<32x64xbf16>, vector<32x64xf32> -> vector<32x64xf32>
      %c0_36 = arith.constant 0 : index
      %c0_37 = arith.constant 0 : index
      %52 = vector.load %arg4[%c0_36, %c0_37] : memref<32x1xf32, #tpu.memory_space<vmem>>, vector<32x1xf32>
      %53 = vector.broadcast %52 : vector<32x1xf32> to vector<32x64xf32>
      %54 = arith.addf %51, %53 : vector<32x64xf32>
      %c1_38 = arith.constant 1 : index
      %c0_39 = arith.constant 0 : index
      %c0_40 = arith.constant 0 : index
      %55 = vector.load %arg2[%c1_38, %c0_39, %c0_40] : memref<2x32x64xbf16, #tpu.memory_space<vmem>>, vector<1x32x64xbf16>
      %56 = vector.shape_cast %55 : vector<1x32x64xbf16> to vector<32x64xbf16>
      %57 = arith.extf %56 : vector<32x64xbf16> to vector<32x64xf32>
      %58 = arith.addf %54, %57 : vector<32x64xf32>
      %c0_41 = arith.constant 0 : index
      %c0_42 = arith.constant 0 : index
      %59 = vector.load %arg5[%c0_41, %c0_42] : memref<8x32xf32, #tpu.memory_space<vmem>>, vector<8x32xf32>
      %cst_43 = arith.constant dense<0.000000e+00> : vector<8x64xf32>
      %60 = tpu.matmul %59, %58, %cst_43 {dimension_numbers = #tpu.dot_dimension_numbers<[1], [0], [0], [1], [0, 0, 1, 1], [], []>} : vector<8x32xf32>, vector<32x64xf32>, vector<8x64xf32> -> vector<8x64xf32>
      %cst_44 = arith.constant dense<0xFF800000> : vector<8xf32>
      %61 = vector.multi_reduction <maximumf>, %60, %cst_44 [1] : vector<8x64xf32> to vector<8xf32>
      %62 = vector.shape_cast %61 : vector<8xf32> to vector<8x1xf32>
      %63 = vector.broadcast %62 : vector<8x1xf32> to vector<8x64xf32>
      %64 = arith.subf %60, %63 : vector<8x64xf32>
      %65 = math.exp %64 : vector<8x64xf32>
      %cst_45 = arith.constant dense<0.000000e+00> : vector<8xf32>
      %66 = vector.multi_reduction <add>, %65, %cst_45 [1] : vector<8x64xf32> to vector<8xf32>
      %67 = vector.shape_cast %66 : vector<8xf32> to vector<8x1xf32>
      %68 = vector.broadcast %67 : vector<8x1xf32> to vector<8x64xf32>
      %69 = arith.divf %65, %68 : vector<8x64xf32>
      %cst_46 = arith.constant dense<0.000000e+00> : vector<8x32xf32>
      %70 = tpu.matmul %69, %58, %cst_46 {dimension_numbers = #tpu.dot_dimension_numbers<[1], [1], [0], [0], [0, 0, 1, 0], [], []>} : vector<8x64xf32>, vector<32x64xf32>, vector<8x32xf32> -> vector<8x32xf32>
      %c8 = arith.constant 8 : index
      %c0_47 = arith.constant 0 : index
      %71 = vector.load %arg10[%c8, %c0_47] : memref<16x32xf32, #tpu.memory_space<vmem>>, vector<8x32xf32>
      tpu.vector_store %arg10[%c8, %c0_47], %70 {strides = array<i32>} : memref<16x32xf32, #tpu.memory_space<vmem>>, vector<8x32xf32>,
    } else {
    }
    %c0 = arith.constant 0 : index
    %c0_1 = arith.constant 0 : index
    %3 = vector.load %arg10[%c0, %c0_1] : memref<16x32xf32, #tpu.memory_space<vmem>>, vector<16x32xf32>
    %4 = arith.truncf %3 : vector<16x32xf32> to vector<16x32xbf16>
    %c0_2 = arith.constant 0 : index
    %c0_3 = arith.constant 0 : index
    %5 = vector.load %arg6[%c0_2, %c0_3] : memref<32x256xbf16, #tpu.memory_space<vmem>>, vector<32x256xbf16>
    %cst = arith.constant dense<0.000000e+00> : vector<16x256xf32>
    %6 = tpu.matmul %4, %5, %cst {dimension_numbers = #tpu.dot_dimension_numbers<[1], [0], [0], [1], [0, 0, 1, 1], [], []>} : vector<16x32xbf16>, vector<32x256xbf16>, vector<16x256xf32> -> vector<16x256xf32>
    %c0_4 = arith.constant 0 : index
    %c0_5 = arith.constant 0 : index
    %7 = vector.load %arg8[%c0_4, %c0_5] : memref<8x256xbf16, #tpu.memory_space<vmem>>, vector<8x256xbf16>
    %8 = arith.extf %7 : vector<8x256xbf16> to vector<8x256xf32>
    %c0_6 = arith.constant 0 : index
    %c0_7 = arith.constant 0 : index
    %9 = vector.load %arg7[%c0_6, %c0_7] : memref<1x256xf32, #tpu.memory_space<vmem>>, vector<1x256xf32>
    %10 = vector.extract_strided_slice %6 {offsets = [0, 0], sizes = [8, 256], strides = [1, 1]} : vector<16x256xf32> to vector<8x256xf32>
    %11 = vector.broadcast %9 : vector<1x256xf32> to vector<8x256xf32>
    %12 = arith.addf %10, %11 : vector<8x256xf32>
    %13 = arith.mulf %12, %8 : vector<8x256xf32>
    %cst_8 = arith.constant dense<0.000000e+00> : vector<256xf32>
    %14 = vector.multi_reduction <add>, %13, %cst_8 [0] : vector<8x256xf32> to vector<256xf32>
    %15 = vector.shape_cast %14 : vector<256xf32> to vector<1x256xf32>
    %16 = vector.extract_strided_slice %6 {offsets = [8, 0], sizes = [8, 256], strides = [1, 1]} : vector<16x256xf32> to vector<8x256xf32>
    %17 = vector.broadcast %9 : vector<1x256xf32> to vector<8x256xf32>
    %18 = arith.addf %16, %17 : vector<8x256xf32>
    %19 = arith.mulf %18, %8 : vector<8x256xf32>
    %cst_9 = arith.constant dense<0.000000e+00> : vector<256xf32>
    %20 = vector.multi_reduction <add>, %19, %cst_9 [0] : vector<8x256xf32> to vector<256xf32>
    %21 = vector.shape_cast %20 : vector<256xf32> to vector<1x256xf32>
    %22 = tpu.concatenate %15, %21 in 0 : vector<1x256xf32>, vector<1x256xf32> -> vector<2x256xf32>
    %c0_10 = arith.constant 0 : index
    %c0_11 = arith.constant 0 : index
    %23 = vector.load %arg9[%c0_10, %c0_11] : memref<2x256xf32, #tpu.memory_space<vmem>>, vector<2x256xf32>
    tpu.vector_store %arg9[%c0_10, %c0_11], %22 {strides = array<i32>} : memref<2x256xf32, #tpu.memory_space<vmem>>, vector<2x256xf32>,
    return
  }
  func.func @transform_0(%arg0: i32) -> (i32, i32, i32) {
    %c0_i32 = arith.constant 0 : i32
    %c0_i32_0 = arith.constant 0 : i32
    %c0_i32_1 = arith.constant 0 : i32
    %c0_i32_2 = arith.constant 0 : i32
    return %c0_i32, %c0_i32_0, %c0_i32_1 : i32, i32, i32
  }
  func.func @transform_1(%arg0: i32) -> (i32, i32, i32) {
    %c0_i32 = arith.constant 0 : i32
    %c0_i32_0 = arith.constant 0 : i32
    %c0_i32_1 = arith.constant 0 : i32
    %c0_i32_2 = arith.constant 0 : i32
    return %c0_i32, %c0_i32_0, %c0_i32_1 : i32, i32, i32
  }
  func.func @transform_2(%arg0: i32) -> (i32, i32) {
    %c0_i32 = arith.constant 0 : i32
    %c0_i32_0 = arith.constant 0 : i32
    %c0_i32_1 = arith.constant 0 : i32
    return %c0_i32, %c0_i32_0 : i32, i32
  }
  func.func @transform_3(%arg0: i32) -> (i32, i32) {
    %c0_i32 = arith.constant 0 : i32
    %c0_i32_0 = arith.constant 0 : i32
    %c0_i32_1 = arith.constant 0 : i32
    return %c0_i32, %c0_i32_0 : i32, i32
  }
  func.func @transform_4(%arg0: i32) -> (i32, i32) {
    %c0_i32 = arith.constant 0 : i32
    %c0_i32_0 = arith.constant 0 : i32
    %c0_i32_1 = arith.constant 0 : i32
    return %c0_i32, %c0_i32_0 : i32, i32
  }
  func.func @transform_5(%arg0: i32) -> (i32, i32) {
    %c0_i32 = arith.constant 0 : i32
    %c0_i32_0 = arith.constant 0 : i32
    return %c0_i32, %arg0 : i32, i32
  }
  func.func @transform_6(%arg0: i32) -> (i32, i32) {
    %c0_i32 = arith.constant 0 : i32
    %c0_i32_0 = arith.constant 0 : i32
    return %c0_i32, %arg0 : i32, i32
  }
  func.func @transform_7(%arg0: i32) -> (i32, i32) {
    %c0_i32 = arith.constant 0 : i32
    %c0_i32_0 = arith.constant 0 : i32
    return %c0_i32, %arg0 : i32, i32
  }
  func.func @transform_8(%arg0: i32) -> (i32, i32) {
    %c0_i32 = arith.constant 0 : i32
    %c0_i32_0 = arith.constant 0 : i32
    return %c0_i32, %arg0 : i32, i32
  }
}

</mosaic_0001>

<bundles_post_ra>
// kernel: tpu_custom_call.1
= control target key start
LH: loop header
LB: loop body
LE: loop exit
PB: predicated region body
PF: predicated region fallthrough
CT: control target
= control target key end

     0   :  { %13 = vsyncpa [#allocation4], 0  ;;  %s1265_s0 = inlined_call_operand.vmem [shape: bf16[2,32,64], index: 0, kind: input, shape index: {}]   ;;  %s1266_s1 = inlined_call_operand.hbm [shape: bf16[2,32,64], index: 1, kind: input, shape index: {}]   ;;  %s1267_s2 = inlined_call_operand.hbm [shape: bf16[32,32], index: 2, kind: input, shape index: {}]   ;;  %s1268_s3 = inlined_call_operand.vmem [shape: f32[32,1], index: 3, kind: input, shape index: {}]   ;;  %s1269_s4 = inlined_call_operand.vmem [shape: f32[8,32], index: 4, kind: input, shape index: {}]   ;;  %s1270_s5 = inlined_call_operand.hbm [shape: bf16[32,256], index: 5, kind: input, shape index: {}]   ;;  %s1271_s6 = inlined_call_operand.vmem [shape: f32[1,256], index: 6, kind: input, shape index: {}]   ;;  %s1272_s7 = inlined_call_operand.hbm [shape: bf16[8,256], index: 7, kind: input, shape index: {}]   ;;  %s1273_s8 = inlined_call_operand.hbm [shape: f32[2,256], index: 8, kind: output, shape index: {}]  }
   0x1   :  { %14 = vsyncpa [#allocation7], 0 }
   0x2   :  { %15 = vsyncpa [#allocation10], 0 }
   0x3   :  { %16 = vsyncpa [#allocation5], 0  ;;  %s1113_s27 = smov [#allocation6]   ;;  %s1114_s29 = smov [#allocation3]  }
   0x4   :  { %s36_s28 = sshll.u32 %s1113_s27, 4  ;;  %s24_s30 = sshll.u32 %s1114_s29, 4  ;;  %s37_s28 = int_to_ptr.vmem [resolvable:$true] %s36_s28  ;;  %s25_s30 = int_to_ptr.vmem [resolvable:$true] %s24_s30 }
   0x5   :  { %s1013_s9 = scalar_lea.vmem %s37_s28, 256  ;;  %p1018_p1 = scmp.lt.s32.totalorder %s37_s28, %s37_s28 }
   0x6   :  { %p1014_p0 = scmp.ne.s32.totalorder %s37_s28, %s1013_s9  ;;  %p1019_p2 = scmp.lt.s32.totalorder %s1013_s9, %s1013_s9 }
   0x8   :  { %p1020_p3 = por %p1019_p2, %p1018_p1 }
   0xa   :  { %p1021_p4 = pnand %p1020_p3, %p1014_p0 }
   0xc   :  { %1024 = shalt.err (!%p1021_p4)
}
   0xd   :  { %s1115_s10 = smov 64   ;;  %s1116_s11 = smov 4  }
   0xe   :  { %42 = dma.hbm_to_vmem [thread:$0]  %s1267_s2, 256, %s37_s28, [#allocation7], %s1115_s10, %s1115_s10, %s1116_s11  }
   0xf   :  { %s1033_s14 = scalar_lea.vmem %s25_s30, 512  ;;  %p1038_p6 = scmp.lt.s32.totalorder %s25_s30, %s25_s30 }
  0x10   :  { %p1034_p5 = scmp.ne.s32.totalorder %s25_s30, %s1033_s14  ;;  %p1039_p7 = scmp.lt.s32.totalorder %s1033_s14, %s1033_s14 }
  0x12   :  { %p1040_p8 = por %p1039_p7, %p1038_p6 }
  0x14   :  { %p1041_p9 = pnand %p1040_p8, %p1034_p5 }
  0x16   :  { %1044 = shalt.err (!%p1041_p9)
}
  0x17   :  { %30 = dma.hbm_to_vmem [thread:$0]  %s1266_s1, 512, %s25_s30, [#allocation4], %s1115_s10, %s1115_s10, %s1116_s11  }
  0x18   :  { %s1117_s17 = smov [#allocation8]  }
  0x19   :  { %s52_s18 = sshll.u32 %s1117_s17, 4  ;;  %s53_s18 = int_to_ptr.vmem [resolvable:$true] %s52_s18 }
  0x1a   :  { %s1053_s19 = scalar_lea.vmem %s53_s18, 512  ;;  %p1058_p11 = scmp.lt.s32.totalorder %s53_s18, %s53_s18 }
  0x1b   :  { %p1054_p10 = scmp.ne.s32.totalorder %s53_s18, %s1053_s19  ;;  %p1059_p12 = scmp.lt.s32.totalorder %s1053_s19, %s1053_s19 }
  0x1d   :  { %p1060_p13 = por %p1059_p12, %p1058_p11 }
  0x1f   :  { %p1061_p0 = pnand %p1060_p13, %p1054_p10 }
  0x21   :  { %1064 = shalt.err (!%p1061_p0)
}
  0x22   :  { %s1118_s2 = smov 128   ;;  %s1119_s20 = smov 8  }
  0x23   :  { %58 = dma.hbm_to_vmem [thread:$0]  %s1270_s5, 512, %s53_s18, [#allocation7], %s1118_s2, %s1118_s2, %s1119_s20  }
  0x24   :  { %s1120_s23 = smov [#allocation9]  }
  0x25   :  { %s67_s24 = sshll.u32 %s1120_s23, 4  ;;  %s68_s24 = int_to_ptr.vmem [resolvable:$true] %s67_s24 }
  0x26   :  { %s1073_s1 = scalar_lea.vmem %s68_s24, 128  ;;  %p1078_p2 = scmp.lt.s32.totalorder %s68_s24, %s68_s24 }
  0x27   :  { %p1074_p1 = scmp.ne.s32.totalorder %s68_s24, %s1073_s1  ;;  %p1079_p3 = scmp.lt.s32.totalorder %s1073_s1, %s1073_s1 }
  0x29   :  { %p1080_p4 = por %p1079_p3, %p1078_p2 }
  0x2b   :  { %p1081_p5 = pnand %p1080_p4, %p1074_p1 }
  0x2d   :  { %1084 = shalt.err (!%p1081_p5)
}
  0x2e   :  { %70 = dma.hbm_to_vmem [thread:$0]  %s1272_s7, 128, %s68_s24, [#allocation10]  }
  0x2f   :  { %1105 = dma.done.wait [#allocation4], 512  }
  0x30   :  { %1106 = vsyncadd [#allocation4], 4294966784 }
  0x31   :  { %1107 = dma.done.wait [#allocation7], 768  }
  0x32   :  { %1108 = vsyncadd [#allocation7], 4294966528 }
  0x33   :  { %1109 = dma.done.wait [#allocation10], 128  }
  0x34   :  { %1110 = vsyncadd [#allocation10], 4294967168  ;;  %v1121_v0 = vmov 0   ;;  %v983_v1 = vld [vmem:[%s1265_s0 + $0x8] sm:$0xff]   ;;  %v984_v2 = vld [vmem:[%s1265_s0] sm:$0xff]   ;;  %vm142_vm0 = vcmask 261120  }
  0x35   :  { %981 = vset.pattern.permute.xlu0 %v1121_v0  ;;  %982 = vset.pattern.permute.xlu1 %v1121_v0  ;;  %v985_v3 = vld [vmem:[#allocation6] sm:$0xff]   ;;  %v986_v4 = vld [vmem:[#allocation6 + $0x8] sm:$0xff]   ;;  %v97_v7 = vld [vmem:[%s1268_s3 + $0x8] sm:$0xff]  ;;  %v1122_v9 = vmov 0.0   ;;  %vm1123_vm1 = vmmov 0   ;;  %vm284_vm2 = vcmask 523264  }
  0x36   :  { %909 = vmatprep.subr.bf16.mxu0 %v983_v1  ;;  %913 = vmatprep.mubr.msk.bf16.mxu0 %vm142_vm0, %v985_v3  ;;  %v99_v5 = vld [vmem:[%s1268_s3 + $0x18] sm:$0xff]  ;;  %v98_v6 = vld [vmem:[%s1268_s3 + $0x10] sm:$0xff]  ;;  %v96_v8 = vld [vmem:[%s1268_s3] sm:$0xff]  ;;  %vm797_vm3 = vcmask 1040384  }
  0x37   :  { %910 = vmatpush3.bf16.msra.mxu0 %v983_v1  ;;  %117 = vperm.xlu0 %981, %v99_v5   ;;  %v879_v13 = vld [vmem:[#allocation3 + $0x8] sm:$0xff]   ;;  %v864_v21 = vld [vmem:[#allocation3] sm:$0xff]   ;;  %v210_v33 = vld [vmem:[%s1269_s4] sm:$0xff] }
  0x38   :  { %911 = vmatprep.subr.bf16.mxu0 %v984_v2  ;;  %107 = vperm.xlu1 %982, %v97_v7   ;;  %v870_v15 = vunpack.c.h.bf16 %v879_v13  ;;  %v869_v19 = vunpack.c.l.bf16 %v879_v13  ;;  %v866_v24 = vunpack.c.h.bf16 %v864_v21  ;;  %v865_v29 = vunpack.c.l.bf16 %v864_v21  ;;  %v987_v31 = vld [vmem:[%s1265_s0 + $0x18] sm:$0xff]   ;;  %v988_v34 = vld [vmem:[%s1265_s0 + $0x10] sm:$0xff]   ;;  %v880_v43 = vld [vmem:[#allocation3 + $0x18] sm:$0xff]  }
  0x39   :  { %917 = vmatprep.subr.mxu1 %v1122_v9  ;;  %925 = vmatprep.mubr.msk.f32.mxu1 %vm1123_vm1, %v1122_v9  ;;  %v989_v35 = vld [vmem:[#allocation6] sm:$0xff]   ;;  %v990_v36 = vld [vmem:[#allocation6 + $0x8] sm:$0xff]   ;;  %v878_v45 = vunpack.c.h.bf16 %v880_v43  ;;  %v877_v48 = vunpack.c.l.bf16 %v880_v43  ;;  %v872_v51 = vld [vmem:[#allocation3 + $0x10] sm:$0xff]  }
  0x3a   :  { %v874_v55 = vunpack.c.h.bf16 %v872_v51  ;;  %v873_v59 = vunpack.c.l.bf16 %v872_v51  ;;  %v996_v21 = vld [vmem:[#allocation8 + $0x4] ss:$8 sps:$4 sm:$0xff]  }
  0x3b   :  { %912 = vmatpush3.bf16.msra.mxu0 %v984_v2  ;;  %112 = vperm.xlu0 %981, %v98_v6  }
  0x3c   :  { %102 = vperm.xlu1 %982, %v96_v8   ;;  %928 = vmatprep.subr.mxu0 %v1122_v9 }
  0x3e   :  { %914 = vmatmul.mubr.msk.bf16.vlgmr.msra.gmra.mxu0 %vm142_vm0, %v986_v4 }
  0x3f   :  { %412 = vperm.xlu0 %981, %v99_v5   ;;  %936 = vmatprep.mubr.msk.f32.mxu0 %vm1123_vm1, %v1122_v9 }
  0x40   :  { %407 = vperm.xlu1 %982, %v98_v6  }
  0x43   :  { %402 = vperm.xlu0 %981, %v97_v7  }
  0x44   :  { %397 = vperm.xlu1 %982, %v96_v8  }
  0xb2   :  { %v118_v10 = vpop.permute.xlu0 %117 }
  0xb3   :  { %v108_v12 = vpop.permute.xlu1 %107 }
  0xb6   :  { %v113_v16 = vpop.permute.xlu0 %112 }
  0xb7   :  { %v103_v26 = vpop.permute.xlu1 %102 }
  0xba   :  { %v413_v40 = vpop.permute.xlu0 %412 }
  0xbb   :  { %v408_v42 = vpop.permute.xlu1 %407 }
  0xbe   :  { %v403_v50 = vpop.permute.xlu0 %402 }
  0xbf   :  { %v398_v56 = vpop.permute.xlu1 %397 }
  0xfe   :  { %v915_v11 = vpop.f32.mrf.mxu0 }
  0xff   :  { %v192_v18 = vadd.f32 %v915_v11, %v113_v16 }
 0x100   :  { %v183_v14 = vpop.f32.mrf.mxu0 }
 0x101   :  { %v208_v27 = vadd.f32 %v869_v19, %v192_v18  ;;  %v184_v28 = vadd.f32 %v183_v14, %v103_v26 }
 0x102   :  { %v916_v17 = vpop.f32.mrf.mxu0 }
 0x103   :  { %v195_v20 = vadd.f32 %v916_v17, %v118_v10  ;;  %v206_v32 = vadd.f32 %v865_v29, %v184_v28  ;;  %v755_v28 = vlaneseq }
 0x104   :  { %v186_v22 = vpop.f32.mrf.mxu0 }
 0x105   :  { %v187_v23 = vadd.f32 %v186_v22, %v108_v12  ;;  %v209_v25 = vadd.f32 %v870_v15, %v195_v20  ;;  %v993_v20 = vld [vmem:[#allocation8 + $0x14] ss:$8 sps:$4 sm:$0xff]   ;;  %v994_v22 = vld [vmem:[#allocation8] ss:$8 sps:$4 sm:$0xff]   ;;  %v756_v29 = vshrl.u32 %v755_v28, 7 }
 0x107   :  { %918 = vmatpush3.msra.mxu1 %v209_v25  ;;  %929 = vmatpush3.xpose.msk.msra.mxu0 %vm284_vm2, %v209_v25  ;;  %v207_v30 = vadd.f32 %v866_v24, %v187_v23 }
 0x108   :  { %919 = vmatprep.subr.mxu1 %v1122_v9  ;;  %930 = vmatprep.subr.mxu0 %v1122_v9 }
 0x109   :  { %920 = vmatpush3.msra.mxu1 %v208_v27 }
 0x10a   :  { %921 = vmatprep.subr.mxu1 %v1122_v9 }
 0x10b   :  { %922 = vmatpush3.msra.mxu1 %v207_v30  ;;  %931 = vmatpush3.xpose.msk.msra.mxu0 %vm284_vm2, %v208_v27 }
 0x10c   :  { %923 = vmatprep.subr.mxu1 %v1122_v9  ;;  %932 = vmatprep.subr.mxu0 %v1122_v9 }
 0x10d   :  { %924 = vmatpush3.msra.mxu1 %v206_v32 }
 0x10e   :  { %926 = vmatmul.mubr.msk.f32.vlgmr.msra.gmra.mxu1 %vm142_vm0, %v210_v33  ;;  %939 = vmatprep.subr.bf16.mxu1 %v987_v31 }
 0x10f   :  { %933 = vmatpush3.xpose.msk.msra.mxu0 %vm284_vm2, %v207_v30  ;;  %940 = vmatpush3.bf16.msra.mxu1 %v987_v31  ;;  %v757_v30 = vsub.s32 0, %v756_v29  ;;  %v753_v31 = vld [vmem:[%s1271_s6] sm:$0x3]  ;;  %s1124_s6 = smov [#allocation11]  }
 0x110   :  { %934 = vmatprep.subr.mxu0 %v1122_v9  ;;  %941 = vmatprep.subr.bf16.mxu1 %v988_v34  ;;  %s818_s2 = sshll.u32 %s1124_s6, 4  ;;  %s819_s2 = int_to_ptr.vmem [resolvable:$true] %s818_s2 }
 0x111   :  { %943 = vmatprep.mubr.msk.bf16.mxu1 %vm142_vm0, %v989_v35  ;;  %s1085_s20 = scalar_lea.vmem %s819_s2, 64  ;;  %p1090_p7 = scmp.lt.s32.totalorder %s819_s2, %s819_s2 }
 0x112   :  { %p1086_p6 = scmp.ne.s32.totalorder %s819_s2, %s1085_s20  ;;  %p1091_p8 = scmp.lt.s32.totalorder %s1085_s20, %s1085_s20 }
 0x113   :  { %935 = vmatpush3.xpose.msk.msra.mxu0 %vm284_vm2, %v206_v32  ;;  %942 = vmatpush3.bf16.msra.mxu1 %v988_v34  ;;  %v761_v32 = vsub.s32 1, %v756_v29  ;;  %v758_v34 = vrot.slane %v753_v31, %v757_v30 }
 0x114   :  { %947 = vmatprep.subr.mxu1 %v1122_v9  ;;  %958 = vmatprep.subr.mxu0 %v1122_v9  ;;  %p1092_p9 = por %p1091_p8, %p1090_p7 }
 0x116   :  { %944 = vmatmul.mubr.msk.bf16.vlgmr.msra.gmra.mxu1 %vm142_vm0, %v990_v36  ;;  %v762_v36 = vrot.slane %v753_v31, %v761_v32  ;;  %p1093_p10 = pnand %p1092_p9, %p1086_p6 }
 0x117   :  { %955 = vmatprep.mubr.msk.f32.mxu1 %vm1123_vm1, %v1122_v9 }
 0x1ce   :  { %v280_v37 = vpop.f32.mrf.mxu1 }
 0x1cf   :  { %v285_v38 = vsel %vm284_vm2, %v280_v37, -inf }
 0x1d0   :  { %286 = vmax.xlane.f32.xlu0 %v285_v38  ;;  %v927_v39 = vpop.f32.mrf.mxu1 }
 0x1d6   :  { %v945_v41 = vpop.f32.mrf.mxu1 }
 0x1d7   :  { %v486_v47 = vadd.f32 %v945_v41, %v408_v42 }
 0x1d8   :  { %v477_v44 = vpop.f32.mrf.mxu1 }
 0x1d9   :  { %v503_v57 = vadd.f32 %v877_v48, %v486_v47  ;;  %v478_v58 = vadd.f32 %v477_v44, %v398_v56 }
 0x1da   :  { %v946_v46 = vpop.f32.mrf.mxu1 }
 0x1db   :  { %v489_v49 = vadd.f32 %v946_v46, %v413_v40  ;;  %v501_v61 = vadd.f32 %v873_v59, %v478_v58 }
 0x1dc   :  { %v480_v52 = vpop.f32.mrf.mxu1 }
 0x1dd   :  { %v504_v53 = vadd.f32 %v878_v45, %v489_v49  ;;  %v481_v54 = vadd.f32 %v480_v52, %v403_v50 }
 0x1df   :  { %948 = vmatpush3.msra.mxu1 %v504_v53  ;;  %v502_v60 = vadd.f32 %v874_v55, %v481_v54 }
 0x1e0   :  { %949 = vmatprep.subr.mxu1 %v1122_v9 }
 0x1e1   :  { %950 = vmatpush3.msra.mxu1 %v503_v57 }
 0x1e2   :  { %951 = vmatprep.subr.mxu1 %v1122_v9 }
 0x1e3   :  { %952 = vmatpush3.msra.mxu1 %v502_v60 }
 0x1e4   :  { %953 = vmatprep.subr.mxu1 %v1122_v9 }
 0x1e5   :  { %954 = vmatpush3.msra.mxu1 %v501_v61 }
 0x1e6   :  { %956 = vmatmul.mubr.msk.f32.vlgmr.msra.gmra.mxu1 %vm142_vm0, %v210_v33  ;;  %719 = vmatprep.subr.bf16.mxu1 %v993_v20  ;;  %v750_v33 = vld [vmem:[#allocation9] sm:$0xff] }
 0x1e7   :  { %739 = vmatprep.mubr.bf16.mxu1 %v1121_v0  ;;  %v751_v35 = vunpack.c.l.bf16 %v750_v33  ;;  %v752_v39 = vunpack.c.h.bf16 %v750_v33 }
 0x259   :  { %v287_v62 = vpop.xlane.xlu0 %286 }
 0x25a   :  { %v288_v63 = vsub.f32 %v280_v37, %v287_v62 }
 0x25c   :  { %v289_v1 = vmul.f32 1.442695, %v288_v63 }
 0x25e   :  { %997 = vpow2.f32 %v289_v1 }
 0x26b   :  { %v998_v2 = vpop.eup %997 }
 0x26c   :  { %v291_v3 = vsel %vm284_vm2, %v998_v2, 0.0 }
 0x26d   :  { %292 = vadd.xlane.f32.xlu0 %v291_v3 }
 0x2a6   :  { %v575_v4 = vpop.f32.mrf.mxu1 }
 0x2a7   :  { %v579_v5 = vsel %vm284_vm2, %v575_v4, -inf }
 0x2a8   :  { %580 = vmax.xlane.f32.xlu1 %v579_v5  ;;  %v957_v6 = vpop.f32.mrf.mxu1 }
 0x2f6   :  { %v293_v7 = vpop.xlane.xlu0 %292 }
 0x2f7   :  { %999 = vrcp.f32 %v293_v7 }
 0x304   :  { %v1000_v8 = vpop.eup %999 }
 0x305   :  { %v295_v10 = vmul.f32 %v1000_v8, %v998_v2 }
 0x307   :  { %937 = vmatmul.mubr.msk.f32.vlgmr.msra.gmra.mxu0 %vm284_vm2, %v295_v10 }
 0x308   :  { %959 = vmatpush3.xpose.msk.msra.mxu0 %vm284_vm2, %v504_v53  ;;  %966 = vmatprep.mubr.msk.f32.mxu0 %vm1123_vm1, %v1122_v9 }
 0x309   :  { %960 = vmatprep.subr.mxu0 %v1122_v9 }
 0x30c   :  { %961 = vmatpush3.xpose.msk.msra.mxu0 %vm284_vm2, %v503_v57 }
 0x30d   :  { %962 = vmatprep.subr.mxu0 %v1122_v9 }
 0x310   :  { %963 = vmatpush3.xpose.msk.msra.mxu0 %vm284_vm2, %v502_v60 }
 0x311   :  { %964 = vmatprep.subr.mxu0 %v1122_v9  ;;  %v991_v9 = vld [vmem:[#allocation8 + $0x10] ss:$8 sps:$4 sm:$0xff]  }
 0x312   :  { %720 = vmatpush1.bf16.msra.mxu1 %v991_v9 }
 0x313   :  { %721 = vmatprep.subr.bf16.mxu1 %v996_v21 }
 0x314   :  { %965 = vmatpush3.xpose.msk.msra.mxu0 %vm284_vm2, %v501_v61 }
 0x316   :  { %722 = vmatpush1.bf16.msra.mxu1 %v994_v22 }
 0x331   :  { %v581_v0 = vpop.xlane.xlu1 %580 }
 0x332   :  { %v582_v11 = vsub.f32 %v575_v4, %v581_v0 }
 0x334   :  { %v583_v12 = vmul.f32 1.442695, %v582_v11 }
 0x336   :  { %1001 = vpow2.f32 %v583_v12 }
 0x343   :  { %v1002_v13 = vpop.eup %1001 }
 0x344   :  { %v585_v14 = vsel %vm284_vm2, %v1002_v13, 0.0 }
 0x345   :  { %586 = vadd.xlane.f32.xlu0 %v585_v14 }
 0x3c7   :  { %v377_v15 = vpop.f32.mrf.mxu0 }
 0x3c8   :  { %381 = vst.msk [vmem:[#allocation2] sm:$0xff] %vm142_vm0, %v377_v15 }
 0x3c9   :  { %v938_v16 = vpop.f32.mrf.mxu0 }
 0x3ce   :  { %v587_v17 = vpop.xlane.xlu0 %586 }
 0x3cf   :  { %1003 = vrcp.f32 %v587_v17  ;;  %v676_v25 = vld [vmem:[#allocation2] sm:$0xff] }
 0x3dc   :  { %v1004_v18 = vpop.eup %1003 }
 0x3dd   :  { %v589_v19 = vmul.f32 %v1004_v18, %v1002_v13 }
 0x3df   :  { %967 = vmatmul.mubr.msk.f32.vlgmr.msra.gmra.mxu0 %vm284_vm2, %v589_v19 }
 0x49f   :  { %v671_v23 = vpop.f32.mrf.mxu0 }
 0x4a0   :  { %675 = vst.msk [vmem:[#allocation2 + $0x8] sm:$0xff] %vm142_vm0, %v671_v23 }
 0x4a1   :  { %v968_v24 = vpop.f32.mrf.mxu0 }
 0x4a7   :  { %v677_v26 = vld [vmem:[#allocation2 + $0x8] sm:$0xff] }
 0x4a8   :  { %v678_v27 = vpack.c.bf16 %v677_v26, %v676_v25 }
 0x4aa   :  { %861 = vmatmul.mubr.msk.bf16.vlgmr.msra.gmra.mxu1 %vm142_vm0, %v678_v27 }
 0x56a   :  { %v741_v37 = vpop.f32.mrf.mxu1 }
 0x56b   :  { %v765_v38 = vadd.f32 %v758_v34, %v741_v37 }
 0x56c   :  { %v743_v40 = vpop.f32.mrf.mxu1 }
 0x56d   :  { %v767_v41 = vmul.f32 %v765_v38, %v751_v35  ;;  %v766_v42 = vadd.f32 %v762_v36, %v743_v40 }
 0x56e   :  { %v745_v43 = vpop.f32.mrf.mxu1 }
 0x56f   :  { %v769_v44 = vrot.slane %v767_v41, 4  ;;  %v768_v45 = vmul.f32 %v766_v42, %v752_v39  ;;  %v781_v46 = vadd.f32 %v758_v34, %v745_v43 }
 0x570   :  { %v747_v47 = vpop.f32.mrf.mxu1 }
 0x571   :  { %v770_v48 = vadd.f32 %v769_v44, %v767_v41  ;;  %v775_v49 = vrot.slane %v768_v45, 4  ;;  %v783_v50 = vmul.f32 %v781_v46, %v751_v35  ;;  %v782_v51 = vadd.f32 %v762_v36, %v747_v47 }
 0x573   :  { %v771_v52 = vrot.slane %v770_v48, 2  ;;  %v776_v53 = vadd.f32 %v775_v49, %v768_v45  ;;  %v785_v54 = vrot.slane %v783_v50, 4  ;;  %v784_v55 = vmul.f32 %v782_v51, %v752_v39 }
 0x575   :  { %v777_v56 = vrot.slane %v776_v53, 2  ;;  %v786_v57 = vadd.f32 %v785_v54, %v783_v50  ;;  %v791_v58 = vrot.slane %v784_v55, 4  ;;  %v772_v59 = vadd.f32 %v771_v52, %v770_v48 }
 0x577   :  { %v778_v60 = vadd.f32 %v777_v56, %v776_v53  ;;  %v787_v61 = vrot.slane %v786_v57, 2  ;;  %v792_v62 = vadd.f32 %v791_v58, %v784_v55  ;;  %v773_v2 = vrot.slane %v772_v59, 1 }
 0x579   :  { %v788_v63 = vadd.f32 %v787_v61, %v786_v57  ;;  %v793_v1 = vrot.slane %v792_v62, 2  ;;  %v779_v3 = vrot.slane %v778_v60, 1  ;;  %v774_v8 = vadd.f32 %v773_v2, %v772_v59 }
 0x57b   :  { %v789_v4 = vrot.slane %v788_v63, 1  ;;  %v794_v5 = vadd.f32 %v793_v1, %v792_v62  ;;  %v780_v10 = vadd.f32 %v779_v3, %v778_v60 }
 0x57d   :  { %v790_v6 = vadd.f32 %v789_v4, %v788_v63  ;;  %v795_v7 = vrot.slane %v794_v5, 1 }
 0x57f   :  { %v796_v0 = vadd.f32 %v795_v7, %v794_v5  ;;  %v798_v11 = vsel %vm797_vm3, %v774_v8, %v790_v6 }
 0x581   :  { %v799_v12 = vsel %vm797_vm3, %v780_v10, %v796_v0 }
 0x582   :  { %v802_v13 = vcombine.low %v798_v11, %v799_v12 }
 0x584   :  { %862 = vst.sshfl [vmem:[#allocation11] sm:$0x33 pattern:$0x76325410] %v802_v13 }
 0x585   :  { %1096 = shalt.err (!%p1093_p10)
}
 0x586   :  { %821 = dma.vmem_to_hbm [thread:$0]  %s819_s2, 64, %s1273_s8, [#allocation5]  }
 0x587   :  { %1111 = dma.done.wait [#allocation5], 64  }
 0x588   :  { %1112 = vsyncadd [#allocation5], 4294967232 }
 0x589   :  { %825 = vsyncpa [#allocation4], 1 }
 0x58a   :  { %826 = vsyncpa [#allocation7], 1 }
 0x58b   :  { %827 = vsyncpa [#allocation10], 1 }
 0x58c   :  { %828 = vsyncpa [#allocation5], 1 }

// kernel: tpu_custom_call.1
= control target key start
LH: loop header
LB: loop body
LE: loop exit
PB: predicated region body
PF: predicated region fallthrough
CT: control target
= control target key end

     0   :  { %13 = vsyncpa [#allocation4], 0  ;;  %s1265_s0 = inlined_call_operand.vmem [shape: bf16[2,32,64], index: 0, kind: input, shape index: {}]   ;;  %s1266_s1 = inlined_call_operand.hbm [shape: bf16[2,32,64], index: 1, kind: input, shape index: {}]   ;;  %s1267_s2 = inlined_call_operand.hbm [shape: bf16[32,32], index: 2, kind: input, shape index: {}]   ;;  %s1268_s3 = inlined_call_operand.vmem [shape: f32[32,1], index: 3, kind: input, shape index: {}]   ;;  %s1269_s4 = inlined_call_operand.vmem [shape: f32[8,32], index: 4, kind: input, shape index: {}]   ;;  %s1270_s5 = inlined_call_operand.hbm [shape: bf16[32,256], index: 5, kind: input, shape index: {}]   ;;  %s1271_s6 = inlined_call_operand.vmem [shape: f32[1,256], index: 6, kind: input, shape index: {}]   ;;  %s1272_s7 = inlined_call_operand.hbm [shape: bf16[8,256], index: 7, kind: input, shape index: {}]   ;;  %s1273_s8 = inlined_call_operand.hbm [shape: f32[2,256], index: 8, kind: output, shape index: {}]  }
   0x1   :  { %14 = vsyncpa [#allocation7], 0 }
   0x2   :  { %15 = vsyncpa [#allocation10], 0 }
   0x3   :  { %16 = vsyncpa [#allocation5], 0  ;;  %s1113_s27 = smov [#allocation6]   ;;  %s1114_s29 = smov [#allocation3]  }
   0x4   :  { %s36_s28 = sshll.u32 %s1113_s27, 4  ;;  %s24_s30 = sshll.u32 %s1114_s29, 4  ;;  %s37_s28 = int_to_ptr.vmem [resolvable:$true] %s36_s28  ;;  %s25_s30 = int_to_ptr.vmem [resolvable:$true] %s24_s30 }
   0x5   :  { %s1013_s9 = scalar_lea.vmem %s37_s28, 256  ;;  %p1018_p1 = scmp.lt.s32.totalorder %s37_s28, %s37_s28 }
   0x6   :  { %p1014_p0 = scmp.ne.s32.totalorder %s37_s28, %s1013_s9  ;;  %p1019_p2 = scmp.lt.s32.totalorder %s1013_s9, %s1013_s9 }
   0x8   :  { %p1020_p3 = por %p1019_p2, %p1018_p1 }
   0xa   :  { %p1021_p4 = pnand %p1020_p3, %p1014_p0 }
   0xc   :  { %1024 = shalt.err (!%p1021_p4)
}
   0xd   :  { %s1115_s10 = smov 64   ;;  %s1116_s11 = smov 4  }
   0xe   :  { %42 = dma.hbm_to_vmem [thread:$0]  %s1267_s2, 256, %s37_s28, [#allocation7], %s1115_s10, %s1115_s10, %s1116_s11  }
   0xf   :  { %s1033_s14 = scalar_lea.vmem %s25_s30, 512  ;;  %p1038_p6 = scmp.lt.s32.totalorder %s25_s30, %s25_s30 }
  0x10   :  { %p1034_p5 = scmp.ne.s32.totalorder %s25_s30, %s1033_s14  ;;  %p1039_p7 = scmp.lt.s32.totalorder %s1033_s14, %s1033_s14 }
  0x12   :  { %p1040_p8 = por %p1039_p7, %p1038_p6 }
  0x14   :  { %p1041_p9 = pnand %p1040_p8, %p1034_p5 }
  0x16   :  { %1044 = shalt.err (!%p1041_p9)
}
  0x17   :  { %30 = dma.hbm_to_vmem [thread:$0]  %s1266_s1, 512, %s25_s30, [#allocation4], %s1115_s10, %s1115_s10, %s1116_s11  }
  0x18   :  { %s1117_s17 = smov [#allocation8]  }
  0x19   :  { %s52_s18 = sshll.u32 %s1117_s17, 4  ;;  %s53_s18 = int_to_ptr.vmem [resolvable:$true] %s52_s18 }
  0x1a   :  { %s1053_s19 = scalar_lea.vmem %s53_s18, 512  ;;  %p1058_p11 = scmp.lt.s32.totalorder %s53_s18, %s53_s18 }
  0x1b   :  { %p1054_p10 = scmp.ne.s32.totalorder %s53_s18, %s1053_s19  ;;  %p1059_p12 = scmp.lt.s32.totalorder %s1053_s19, %s1053_s19 }
  0x1d   :  { %p1060_p13 = por %p1059_p12, %p1058_p11 }
  0x1f   :  { %p1061_p0 = pnand %p1060_p13, %p1054_p10 }
  0x21   :  { %1064 = shalt.err (!%p1061_p0)
}
  0x22   :  { %s1118_s2 = smov 128   ;;  %s1119_s20 = smov 8  }
  0x23   :  { %58 = dma.hbm_to_vmem [thread:$0]  %s1270_s5, 512, %s53_s18, [#allocation7], %s1118_s2, %s1118_s2, %s1119_s20  }
  0x24   :  { %s1120_s23 = smov [#allocation9]  }
  0x25   :  { %s67_s24 = sshll.u32 %s1120_s23, 4  ;;  %s68_s24 = int_to_ptr.vmem [resolvable:$true] %s67_s24 }
  0x26   :  { %s1073_s1 = scalar_lea.vmem %s68_s24, 128  ;;  %p1078_p2 = scmp.lt.s32.totalorder %s68_s24, %s68_s24 }
  0x27   :  { %p1074_p1 = scmp.ne.s32.totalorder %s68_s24, %s1073_s1  ;;  %p1079_p3 = scmp.lt.s32.totalorder %s1073_s1, %s1073_s1 }
  0x29   :  { %p1080_p4 = por %p1079_p3, %p1078_p2 }
  0x2b   :  { %p1081_p5 = pnand %p1080_p4, %p1074_p1 }
  0x2d   :  { %1084 = shalt.err (!%p1081_p5)
}
  0x2e   :  { %70 = dma.hbm_to_vmem [thread:$0]  %s1272_s7, 128, %s68_s24, [#allocation10]  }
  0x2f   :  { %1105 = dma.done.wait [#allocation4], 512  }
  0x30   :  { %1106 = vsyncadd [#allocation4], 4294966784 }
  0x31   :  { %1107 = dma.done.wait [#allocation7], 768  }
  0x32   :  { %1108 = vsyncadd [#allocation7], 4294966528 }
  0x33   :  { %1109 = dma.done.wait [#allocation10], 128  }
  0x34   :  { %1110 = vsyncadd [#allocation10], 4294967168  ;;  %v1121_v0 = vmov 0   ;;  %v983_v1 = vld [vmem:[%s1265_s0 + $0x8] sm:$0xff]   ;;  %v984_v2 = vld [vmem:[%s1265_s0] sm:$0xff]   ;;  %vm142_vm0 = vcmask 261120  }
  0x35   :  { %981 = vset.pattern.permute.xlu0 %v1121_v0  ;;  %982 = vset.pattern.permute.xlu1 %v1121_v0  ;;  %v985_v3 = vld [vmem:[#allocation6] sm:$0xff]   ;;  %v986_v4 = vld [vmem:[#allocation6 + $0x8] sm:$0xff]   ;;  %v97_v7 = vld [vmem:[%s1268_s3 + $0x8] sm:$0xff]  ;;  %v1122_v9 = vmov 0.0   ;;  %vm1123_vm1 = vmmov 0   ;;  %vm284_vm2 = vcmask 523264  }
  0x36   :  { %909 = vmatprep.subr.bf16.mxu0 %v983_v1  ;;  %913 = vmatprep.mubr.msk.bf16.mxu0 %vm142_vm0, %v985_v3  ;;  %v99_v5 = vld [vmem:[%s1268_s3 + $0x18] sm:$0xff]  ;;  %v98_v6 = vld [vmem:[%s1268_s3 + $0x10] sm:$0xff]  ;;  %v96_v8 = vld [vmem:[%s1268_s3] sm:$0xff]  ;;  %vm797_vm3 = vcmask 1040384  }
  0x37   :  { %910 = vmatpush3.bf16.msra.mxu0 %v983_v1  ;;  %117 = vperm.xlu0 %981, %v99_v5   ;;  %v879_v13 = vld [vmem:[#allocation3 + $0x8] sm:$0xff]   ;;  %v864_v21 = vld [vmem:[#allocation3] sm:$0xff]   ;;  %v210_v33 = vld [vmem:[%s1269_s4] sm:$0xff] }
  0x38   :  { %911 = vmatprep.subr.bf16.mxu0 %v984_v2  ;;  %107 = vperm.xlu1 %982, %v97_v7   ;;  %v870_v15 = vunpack.c.h.bf16 %v879_v13  ;;  %v869_v19 = vunpack.c.l.bf16 %v879_v13  ;;  %v866_v24 = vunpack.c.h.bf16 %v864_v21  ;;  %v865_v29 = vunpack.c.l.bf16 %v864_v21  ;;  %v987_v31 = vld [vmem:[%s1265_s0 + $0x18] sm:$0xff]   ;;  %v988_v34 = vld [vmem:[%s1265_s0 + $0x10] sm:$0xff]   ;;  %v880_v43 = vld [vmem:[#allocation3 + $0x18] sm:$0xff]  }
  0x39   :  { %917 = vmatprep.subr.mxu1 %v1122_v9  ;;  %925 = vmatprep.mubr.msk.f32.mxu1 %vm1123_vm1, %v1122_v9  ;;  %v989_v35 = vld [vmem:[#allocation6] sm:$0xff]   ;;  %v990_v36 = vld [vmem:[#allocation6 + $0x8] sm:$0xff]   ;;  %v878_v45 = vunpack.c.h.bf16 %v880_v43  ;;  %v877_v48 = vunpack.c.l.bf16 %v880_v43  ;;  %v872_v51 = vld [vmem:[#allocation3 + $0x10] sm:$0xff]  }
  0x3a   :  { %v874_v55 = vunpack.c.h.bf16 %v872_v51  ;;  %v873_v59 = vunpack.c.l.bf16 %v872_v51  ;;  %v996_v21 = vld [vmem:[#allocation8 + $0x4] ss:$8 sps:$4 sm:$0xff]  }
  0x3b   :  { %912 = vmatpush3.bf16.msra.mxu0 %v984_v2  ;;  %112 = vperm.xlu0 %981, %v98_v6  }
  0x3c   :  { %102 = vperm.xlu1 %982, %v96_v8   ;;  %928 = vmatprep.subr.mxu0 %v1122_v9 }
  0x3e   :  { %914 = vmatmul.mubr.msk.bf16.vlgmr.msra.gmra.mxu0 %vm142_vm0, %v986_v4 }
  0x3f   :  { %412 = vperm.xlu0 %981, %v99_v5   ;;  %936 = vmatprep.mubr.msk.f32.mxu0 %vm1123_vm1, %v1122_v9 }
  0x40   :  { %407 = vperm.xlu1 %982, %v98_v6  }
  0x43   :  { %402 = vperm.xlu0 %981, %v97_v7  }
  0x44   :  { %397 = vperm.xlu1 %982, %v96_v8  }
  0xb2   :  { %v118_v10 = vpop.permute.xlu0 %117 }
  0xb3   :  { %v108_v12 = vpop.permute.xlu1 %107 }
  0xb6   :  { %v113_v16 = vpop.permute.xlu0 %112 }
  0xb7   :  { %v103_v26 = vpop.permute.xlu1 %102 }
  0xba   :  { %v413_v40 = vpop.permute.xlu0 %412 }
  0xbb   :  { %v408_v42 = vpop.permute.xlu1 %407 }
  0xbe   :  { %v403_v50 = vpop.permute.xlu0 %402 }
  0xbf   :  { %v398_v56 = vpop.permute.xlu1 %397 }
  0xfe   :  { %v915_v11 = vpop.f32.mrf.mxu0 }
  0xff   :  { %v192_v18 = vadd.f32 %v915_v11, %v113_v16 }
 0x100   :  { %v183_v14 = vpop.f32.mrf.mxu0 }
 0x101   :  { %v208_v27 = vadd.f32 %v869_v19, %v192_v18  ;;  %v184_v28 = vadd.f32 %v183_v14, %v103_v26 }
 0x102   :  { %v916_v17 = vpop.f32.mrf.mxu0 }
 0x103   :  { %v195_v20 = vadd.f32 %v916_v17, %v118_v10  ;;  %v206_v32 = vadd.f32 %v865_v29, %v184_v28  ;;  %v755_v28 = vlaneseq }
 0x104   :  { %v186_v22 = vpop.f32.mrf.mxu0 }
 0x105   :  { %v187_v23 = vadd.f32 %v186_v22, %v108_v12  ;;  %v209_v25 = vadd.f32 %v870_v15, %v195_v20  ;;  %v993_v20 = vld [vmem:[#allocation8 + $0x14] ss:$8 sps:$4 sm:$0xff]   ;;  %v994_v22 = vld [vmem:[#allocation8] ss:$8 sps:$4 sm:$0xff]   ;;  %v756_v29 = vshrl.u32 %v755_v28, 7 }
 0x107   :  { %918 = vmatpush3.msra.mxu1 %v209_v25  ;;  %929 = vmatpush3.xpose.msk.msra.mxu0 %vm284_vm2, %v209_v25  ;;  %v207_v30 = vadd.f32 %v866_v24, %v187_v23 }
 0x108   :  { %919 = vmatprep.subr.mxu1 %v1122_v9  ;;  %930 = vmatprep.subr.mxu0 %v1122_v9 }
 0x109   :  { %920 = vmatpush3.msra.mxu1 %v208_v27 }
 0x10a   :  { %921 = vmatprep.subr.mxu1 %v1122_v9 }
 0x10b   :  { %922 = vmatpush3.msra.mxu1 %v207_v30  ;;  %931 = vmatpush3.xpose.msk.msra.mxu0 %vm284_vm2, %v208_v27 }
 0x10c   :  { %923 = vmatprep.subr.mxu1 %v1122_v9  ;;  %932 = vmatprep.subr.mxu0 %v1122_v9 }
 0x10d   :  { %924 = vmatpush3.msra.mxu1 %v206_v32 }
 0x10e   :  { %926 = vmatmul.mubr.msk.f32.vlgmr.msra.gmra.mxu1 %vm142_vm0, %v210_v33  ;;  %939 = vmatprep.subr.bf16.mxu1 %v987_v31 }
 0x10f   :  { %933 = vmatpush3.xpose.msk.msra.mxu0 %vm284_vm2, %v207_v30  ;;  %940 = vmatpush3.bf16.msra.mxu1 %v987_v31  ;;  %v757_v30 = vsub.s32 0, %v756_v29  ;;  %v753_v31 = vld [vmem:[%s1271_s6] sm:$0x3]  ;;  %s1124_s6 = smov [#allocation11]  }
 0x110   :  { %934 = vmatprep.subr.mxu0 %v1122_v9  ;;  %941 = vmatprep.subr.bf16.mxu1 %v988_v34  ;;  %s818_s2 = sshll.u32 %s1124_s6, 4  ;;  %s819_s2 = int_to_ptr.vmem [resolvable:$true] %s818_s2 }
 0x111   :  { %943 = vmatprep.mubr.msk.bf16.mxu1 %vm142_vm0, %v989_v35  ;;  %s1085_s20 = scalar_lea.vmem %s819_s2, 64  ;;  %p1090_p7 = scmp.lt.s32.totalorder %s819_s2, %s819_s2 }
 0x112   :  { %p1086_p6 = scmp.ne.s32.totalorder %s819_s2, %s1085_s20  ;;  %p1091_p8 = scmp.lt.s32.totalorder %s1085_s20, %s1085_s20 }
 0x113   :  { %935 = vmatpush3.xpose.msk.msra.mxu0 %vm284_vm2, %v206_v32  ;;  %942 = vmatpush3.bf16.msra.mxu1 %v988_v34  ;;  %v761_v32 = vsub.s32 1, %v756_v29  ;;  %v758_v34 = vrot.slane %v753_v31, %v757_v30 }
 0x114   :  { %947 = vmatprep.subr.mxu1 %v1122_v9  ;;  %958 = vmatprep.subr.mxu0 %v1122_v9  ;;  %p1092_p9 = por %p1091_p8, %p1090_p7 }
 0x116   :  { %944 = vmatmul.mubr.msk.bf16.vlgmr.msra.gmra.mxu1 %vm142_vm0, %v990_v36  ;;  %v762_v36 = vrot.slane %v753_v31, %v761_v32  ;;  %p1093_p10 = pnand %p1092_p9, %p1086_p6 }
 0x117   :  { %955 = vmatprep.mubr.msk.f32.mxu1 %vm1123_vm1, %v1122_v9 }
 0x1ce   :  { %v280_v37 = vpop.f32.mrf.mxu1 }
 0x1cf   :  { %v285_v38 = vsel %vm284_vm2, %v280_v37, -inf }
 0x1d0   :  { %286 = vmax.xlane.f32.xlu0 %v285_v38  ;;  %v927_v39 = vpop.f32.mrf.mxu1 }
 0x1d6   :  { %v945_v41 = vpop.f32.mrf.mxu1 }
 0x1d7   :  { %v486_v47 = vadd.f32 %v945_v41, %v408_v42 }
 0x1d8   :  { %v477_v44 = vpop.f32.mrf.mxu1 }
 0x1d9   :  { %v503_v57 = vadd.f32 %v877_v48, %v486_v47  ;;  %v478_v58 = vadd.f32 %v477_v44, %v398_v56 }
 0x1da   :  { %v946_v46 = vpop.f32.mrf.mxu1 }
 0x1db   :  { %v489_v49 = vadd.f32 %v946_v46, %v413_v40  ;;  %v501_v61 = vadd.f32 %v873_v59, %v478_v58 }
 0x1dc   :  { %v480_v52 = vpop.f32.mrf.mxu1 }
 0x1dd   :  { %v504_v53 = vadd.f32 %v878_v45, %v489_v49  ;;  %v481_v54 = vadd.f32 %v480_v52, %v403_v50 }
 0x1df   :  { %948 = vmatpush3.msra.mxu1 %v504_v53  ;;  %v502_v60 = vadd.f32 %v874_v55, %v481_v54 }
 0x1e0   :  { %949 = vmatprep.subr.mxu1 %v1122_v9 }
 0x1e1   :  { %950 = vmatpush3.msra.mxu1 %v503_v57 }
 0x1e2   :  { %951 = vmatprep.subr.mxu1 %v1122_v9 }
 0x1e3   :  { %952 = vmatpush3.msra.mxu1 %v502_v60 }
 0x1e4   :  { %953 = vmatprep.subr.mxu1 %v1122_v9 }
 0x1e5   :  { %954 = vmatpush3.msra.mxu1 %v501_v61 }
 0x1e6   :  { %956 = vmatmul.mubr.msk.f32.vlgmr.msra.gmra.mxu1 %vm142_vm0, %v210_v33  ;;  %719 = vmatprep.subr.bf16.mxu1 %v993_v20  ;;  %v750_v33 = vld [vmem:[#allocation9] sm:$0xff] }
 0x1e7   :  { %739 = vmatprep.mubr.bf16.mxu1 %v1121_v0  ;;  %v751_v35 = vunpack.c.l.bf16 %v750_v33  ;;  %v752_v39 = vunpack.c.h.bf16 %v750_v33 }
 0x259   :  { %v287_v62 = vpop.xlane.xlu0 %286 }
 0x25a   :  { %v288_v63 = vsub.f32 %v280_v37, %v287_v62 }
 0x25c   :  { %v289_v1 = vmul.f32 1.442695, %v288_v63 }
 0x25e   :  { %997 = vpow2.f32 %v289_v1 }
 0x26b   :  { %v998_v2 = vpop.eup %997 }
 0x26c   :  { %v291_v3 = vsel %vm284_vm2, %v998_v2, 0.0 }
 0x26d   :  { %292 = vadd.xlane.f32.xlu0 %v291_v3 }
 0x2a6   :  { %v575_v4 = vpop.f32.mrf.mxu1 }
 0x2a7   :  { %v579_v5 = vsel %vm284_vm2, %v575_v4, -inf }
 0x2a8   :  { %580 = vmax.xlane.f32.xlu1 %v579_v5  ;;  %v957_v6 = vpop.f32.mrf.mxu1 }
 0x2f6   :  { %v293_v7 = vpop.xlane.xlu0 %292 }
 0x2f7   :  { %999 = vrcp.f32 %v293_v7 }
 0x304   :  { %v1000_v8 = vpop.eup %999 }
 0x305   :  { %v295_v10 = vmul.f32 %v1000_v8, %v998_v2 }
 0x307   :  { %937 = vmatmul.mubr.msk.f32.vlgmr.msra.gmra.mxu0 %vm284_vm2, %v295_v10 }
 0x308   :  { %959 = vmatpush3.xpose.msk.msra.mxu0 %vm284_vm2, %v504_v53  ;;  %966 = vmatprep.mubr.msk.f32.mxu0 %vm1123_vm1, %v1122_v9 }
 0x309   :  { %960 = vmatprep.subr.mxu0 %v1122_v9 }
 0x30c   :  { %961 = vmatpush3.xpose.msk.msra.mxu0 %vm284_vm2, %v503_v57 }
 0x30d   :  { %962 = vmatprep.subr.mxu0 %v1122_v9 }
 0x310   :  { %963 = vmatpush3.xpose.msk.msra.mxu0 %vm284_vm2, %v502_v60 }
 0x311   :  { %964 = vmatprep.subr.mxu0 %v1122_v9  ;;  %v991_v9 = vld [vmem:[#allocation8 + $0x10] ss:$8 sps:$4 sm:$0xff]  }
 0x312   :  { %720 = vmatpush1.bf16.msra.mxu1 %v991_v9 }
 0x313   :  { %721 = vmatprep.subr.bf16.mxu1 %v996_v21 }
 0x314   :  { %965 = vmatpush3.xpose.msk.msra.mxu0 %vm284_vm2, %v501_v61 }
 0x316   :  { %722 = vmatpush1.bf16.msra.mxu1 %v994_v22 }
 0x331   :  { %v581_v0 = vpop.xlane.xlu1 %580 }
 0x332   :  { %v582_v11 = vsub.f32 %v575_v4, %v581_v0 }
 0x334   :  { %v583_v12 = vmul.f32 1.442695, %v582_v11 }
 0x336   :  { %1001 = vpow2.f32 %v583_v12 }
 0x343   :  { %v1002_v13 = vpop.eup %1001 }
 0x344   :  { %v585_v14 = vsel %vm284_vm2, %v1002_v13, 0.0 }
 0x345   :  { %586 = vadd.xlane.f32.xlu0 %v585_v14 }
 0x3c7   :  { %v377_v15 = vpop.f32.mrf.mxu0 }
 0x3c8   :  { %381 = vst.msk [vmem:[#allocation2] sm:$0xff] %vm142_vm0, %v377_v15 }
 0x3c9   :  { %v938_v16 = vpop.f32.mrf.mxu0 }
 0x3ce   :  { %v587_v17 = vpop.xlane.xlu0 %586 }
 0x3cf   :  { %1003 = vrcp.f32 %v587_v17  ;;  %v676_v25 = vld [vmem:[#allocation2] sm:$0xff] }
 0x3dc   :  { %v1004_v18 = vpop.eup %1003 }
 0x3dd   :  { %v589_v19 = vmul.f32 %v1004_v18, %v1002_v13 }
 0x3df   :  { %967 = vmatmul.mubr.msk.f32.vlgmr.msra.gmra.mxu0 %vm284_vm2, %v589_v19 }
 0x49f   :  { %v671_v23 = vpop.f32.mrf.mxu0 }
 0x4a0   :  { %675 = vst.msk [vmem:[#allocation2 + $0x8] sm:$0xff] %vm142_vm0, %v671_v23 }
 0x4a1   :  { %v968_v24 = vpop.f32.mrf.mxu0 }
 0x4a7   :  { %v677_v26 = vld [vmem:[#allocation2 + $0x8] sm:$0xff] }
 0x4a8   :  { %v678_v27 = vpack.c.bf16 %v677_v26, %v676_v25 }
 0x4aa   :  { %861 = vmatmul.mubr.msk.bf16.vlgmr.msra.gmra.mxu1 %vm142_vm0, %v678_v27 }
 0x56a   :  { %v741_v37 = vpop.f32.mrf.mxu1 }
 0x56b   :  { %v765_v38 = vadd.f32 %v758_v34, %v741_v37 }
 0x56c   :  { %v743_v40 = vpop.f32.mrf.mxu1 }
 0x56d   :  { %v767_v41 = vmul.f32 %v765_v38, %v751_v35  ;;  %v766_v42 = vadd.f32 %v762_v36, %v743_v40 }
 0x56e   :  { %v745_v43 = vpop.f32.mrf.mxu1 }
 0x56f   :  { %v769_v44 = vrot.slane %v767_v41, 4  ;;  %v768_v45 = vmul.f32 %v766_v42, %v752_v39  ;;  %v781_v46 = vadd.f32 %v758_v34, %v745_v43 }
 0x570   :  { %v747_v47 = vpop.f32.mrf.mxu1 }
 0x571   :  { %v770_v48 = vadd.f32 %v769_v44, %v767_v41  ;;  %v775_v49 = vrot.slane %v768_v45, 4  ;;  %v783_v50 = vmul.f32 %v781_v46, %v751_v35  ;;  %v782_v51 = vadd.f32 %v762_v36, %v747_v47 }
 0x573   :  { %v771_v52 = vrot.slane %v770_v48, 2  ;;  %v776_v53 = vadd.f32 %v775_v49, %v768_v45  ;;  %v785_v54 = vrot.slane %v783_v50, 4  ;;  %v784_v55 = vmul.f32 %v782_v51, %v752_v39 }
 0x575   :  { %v777_v56 = vrot.slane %v776_v53, 2  ;;  %v786_v57 = vadd.f32 %v785_v54, %v783_v50  ;;  %v791_v58 = vrot.slane %v784_v55, 4  ;;  %v772_v59 = vadd.f32 %v771_v52, %v770_v48 }
 0x577   :  { %v778_v60 = vadd.f32 %v777_v56, %v776_v53  ;;  %v787_v61 = vrot.slane %v786_v57, 2  ;;  %v792_v62 = vadd.f32 %v791_v58, %v784_v55  ;;  %v773_v2 = vrot.slane %v772_v59, 1 }
 0x579   :  { %v788_v63 = vadd.f32 %v787_v61, %v786_v57  ;;  %v793_v1 = vrot.slane %v792_v62, 2  ;;  %v779_v3 = vrot.slane %v778_v60, 1  ;;  %v774_v8 = vadd.f32 %v773_v2, %v772_v59 }
 0x57b   :  { %v789_v4 = vrot.slane %v788_v63, 1  ;;  %v794_v5 = vadd.f32 %v793_v1, %v792_v62  ;;  %v780_v10 = vadd.f32 %v779_v3, %v778_v60 }
 0x57d   :  { %v790_v6 = vadd.f32 %v789_v4, %v788_v63  ;;  %v795_v7 = vrot.slane %v794_v5, 1 }
 0x57f   :  { %v796_v0 = vadd.f32 %v795_v7, %v794_v5  ;;  %v798_v11 = vsel %vm797_vm3, %v774_v8, %v790_v6 }
 0x581   :  { %v799_v12 = vsel %vm797_vm3, %v780_v10, %v796_v0 }
 0x582   :  { %v802_v13 = vcombine.low %v798_v11, %v799_v12 }
 0x584   :  { %862 = vst.sshfl [vmem:[#allocation11] sm:$0x33 pattern:$0x76325410] %v802_v13 }
 0x585   :  { %1096 = shalt.err (!%p1093_p10)
}
 0x586   :  { %821 = dma.vmem_to_hbm [thread:$0]  %s819_s2, 64, %s1273_s8, [#allocation5]  }
 0x587   :  { %1111 = dma.done.wait [#allocation5], 64  }
 0x588   :  { %1112 = vsyncadd [#allocation5], 4294967232 }
 0x589   :  { %825 = vsyncpa [#allocation4], 1 }
 0x58a   :  { %826 = vsyncpa [#allocation7], 1 }
 0x58b   :  { %827 = vsyncpa [#allocation10], 1 }
 0x58c   :  { %828 = vsyncpa [#allocation5], 1 }

</bundles_post_ra>
